<compile_context>
chip_gen: v7x
topology: tpu7x:2x2x1
jax: 0.10.0
libtpu: 0.0.40
codegen_flags: <defaults>
</compile_context>

<pallas_src>
import math

import jax
import jax.numpy as jnp
from jax.experimental import pallas as pl
from jax.experimental.pallas import tpu as pltpu


def _round_up(x, m):
    return ((x + m - 1) // m) * m


# -----------------------------------------------------------------------------
# Kernel body.  grid = (batch tiles, K tiles over the question-dict axis)
# -----------------------------------------------------------------------------
def _baseline_kernel(qw_ref, iw_ref, q_ref, w1_ref, img_ref, b1_ref,
                     w2_ref, b2_ref, out_ref, acc_ref):
    k = pl.program_id(1)

    @pl.when(k == 0)
    def _():
        # Fold the Linear_q bias into the accumulator init: acc = b1 (+ q @ w1).
        acc_ref[...] = jnp.broadcast_to(b1_ref[...], acc_ref.shape)

    # Partial word_embeddings: (tm, tk) bf16 @ (tk, W) bf16 -> f32 accumulator.
    acc_ref[...] += jnp.dot(q_ref[...], w1_ref[...],
                            preferred_element_type=jnp.float32)

    @pl.when(k == pl.num_programs(1) - 1)
    def _():
        # combined = question_weight * word_embeddings + image_weight * image
        combined = qw_ref[0, 0] * acc_ref[...] + iw_ref[0, 0] * img_ref[...]
        # Answering head: bf16 feed to the MXU, f32 accumulation, +b2.
        out_ref[...] = (jnp.dot(combined.astype(jnp.bfloat16), w2_ref[...],
                                preferred_element_type=jnp.float32)
                        + b2_ref[...]).astype(out_ref.dtype)


# -----------------------------------------------------------------------------
# VMEM budgeting (generation-aware)
# -----------------------------------------------------------------------------
def _vmem_capacity_bytes():
    try:
        return int(pltpu.get_tpu_info().vmem_capacity_bytes)
    except Exception:
        return 64 << 20          # conservative default: v7x per-TensorCore VMEM


def _vmem_budget_bytes():
    # ~112 MiB usable on v5e/v6e (128 MiB physical), ~48 MiB on v7x (64 MiB),
    # leaving headroom for compiler-internal scratch.
    return max(32 << 20, _vmem_capacity_bytes() - (16 << 20))


def _tile_vmem_bytes(tm, tk, W_pad, A_pad):
    # Pessimistic estimate (everything double-buffered) so tile choice stays
    # safe even if the single-buffer (pl.Buffered(1)) path is unavailable.
    return (2 * (tm * tk * 2            # question block (bf16)
                 + tk * W_pad * 2       # w1 block (bf16)
                 + tm * W_pad * 4       # image block (f32)
                 + tm * A_pad * 4       # output tile (f32)
                 + W_pad * A_pad * 2    # w2 (bf16, grid-resident)
                 + W_pad * 4            # b1 (f32)
                 + A_pad * 4)           # b2 (f32)
            + tm * W_pad * 4)           # f32 accumulator scratch


# -----------------------------------------------------------------------------
# One-time weight preparation (hoisted out of the per-forward path)
# -----------------------------------------------------------------------------
def prepare_params(params, *, tk=None):
    """Pads + casts the weights once and fixes the K tile.

    MXU-feeding weights are stored bf16 in HBM; biases stay f32.
    """
    w1, b1 = params["w1"], params["b1"]          # (Q, W), (1, W)
    w2, b2 = params["w2"], params["b2"]          # (W, A), (1, A)
    Q, W = w1.shape
    W2, A = w2.shape
    assert W2 == W

    if tk is None:
        # Large K tile amortizes the ~0.35us per-grid-step overhead; the whole
        # reduction collapses to a single step whenever Q <= 1024.
        tk = min(_round_up(Q, 128), 1024)
    tk = max(128, _round_up(tk, 128))

    Q_pad = _round_up(Q, tk)
    W_pad = _round_up(W, 128)
    A_pad = _round_up(A, 128)

    def pad2(x, r, c, dtype):
        return jnp.pad(x, ((0, r - x.shape[0]), (0, c - x.shape[1]))).astype(dtype)

    return {
        "w1": pad2(w1, Q_pad, W_pad, jnp.bfloat16),
        "b1": pad2(b1, 1, W_pad, jnp.float32),
        "w2": pad2(w2, W_pad, A_pad, jnp.bfloat16),
        "b2": pad2(b2, 1, A_pad, jnp.float32),
        "question_weight": params["question_weight"].reshape(1, 1).astype(jnp.float32),
        "image_weight": params["image_weight"].reshape(1, 1).astype(jnp.float32),
        "dims": (Q, W, A, Q_pad, W_pad, A_pad, tk),
    }


# -----------------------------------------------------------------------------
# Forward pass
# -----------------------------------------------------------------------------
def simple_baseline_net2(image, question_encoding, prepared, *, tm=None):
    """image: (B, 1, W) f32; question_encoding: (B, Q) f32; prepared: prepare_params()."""
    Q, W, A, Q_pad, W_pad, A_pad, tk = prepared["dims"]
    B = image.shape[0]
    assert question_encoding.shape == (B, Q)
    assert image.shape[1] == 1 and image.shape[2] == W, (
        "image feature dim must equal word_feature_size")

    budget = _vmem_budget_bytes()

    # Batch tile: collapse the batch grid (n_bt=1) whenever it fits VMEM so w1
    # is streamed from HBM exactly once; multiple of 16 for bf16 sublane packing.
    if tm is None:
        tm = min(_round_up(B, 16), 1024)
    tm = max(16, _round_up(tm, 16))
    while tm > 16 and _tile_vmem_bytes(tm, tk, W_pad, A_pad) > budget:
        tm = max(16, _round_up(tm // 2, 16))
    # TODO(synk): for very large answer vocabularies, tile the second matmul's
    # N dimension (A_pad) instead of keeping all of w2 resident in VMEM.

    B_pad = _round_up(B, tm)
    n_bt = B_pad // tm
    n_kt = Q_pad // tk
    # NOTE(v7x): when B_pad > tm the "parallel" batch axis splits across the
    # two TensorCores; at small B we prefer n_bt=1 (single HBM pass over w1).

    # Per-call activation prep only (weights were padded/cast once up front).
    # image_features stay f32 -- they never feed the MXU.
    image_features = image.reshape(B, W)        # the .view(B, image.shape[2])
    q_p = jnp.pad(question_encoding,
                  ((0, B_pad - B), (0, Q_pad - Q))).astype(jnp.bfloat16)
    img_p = jnp.pad(image_features,
                    ((0, B_pad - B), (0, W_pad - W))).astype(jnp.float32)

    cost = pl.CostEstimate(
        flops=2 * B_pad * Q_pad * W_pad + 2 * B_pad * W_pad * A_pad,
        transcendentals=0,
        bytes_accessed=int(B_pad * Q_pad * 2 + B_pad * W_pad * 4
                           + n_bt * Q_pad * W_pad * 2 + W_pad * A_pad * 2
                           + W_pad * 4 + A_pad * 4 + B_pad * A_pad * 4),
    )

    smem = pl.BlockSpec(memory_space=pltpu.MemorySpace.SMEM)
    vmem_limit = int(budget)

    def _call(single_buffer_residents):
        # Grid-resident operands (constant index maps: w2, b1, b2) need no
        # double buffer; pl.Buffered(1) reclaims that VMEM (matters on v7x).
        res = ({"pipeline_mode": pl.Buffered(1)}
               if single_buffer_residents else {})
        grid_spec = pltpu.PrefetchScalarGridSpec(
            num_scalar_prefetch=0,
            grid=(n_bt, n_kt),
            in_specs=[
                smem,                                                    # question_weight
                smem,                                                    # image_weight
                pl.BlockSpec((tm, tk), lambda i, k: (i, k)),             # question enc
                pl.BlockSpec((tk, W_pad), lambda i, k: (k, 0)),          # w1 (batch-indep)
                pl.BlockSpec((tm, W_pad), lambda i, k: (i, 0)),          # image feats (f32)
                pl.BlockSpec((1, W_pad), lambda i, k: (0, 0), **res),    # b1 (resident)
                pl.BlockSpec((W_pad, A_pad), lambda i, k: (0, 0), **res),  # w2 (resident)
                pl.BlockSpec((1, A_pad), lambda i, k: (0, 0), **res),    # b2 (resident)
            ],
            out_specs=pl.BlockSpec((tm, A_pad), lambda i, k: (i, 0)),
            scratch_shapes=[pltpu.VMEM((tm, W_pad), jnp.float32)],
        )
        return pl.pallas_call(
            _baseline_kernel,
            out_shape=jax.ShapeDtypeStruct((B_pad, A_pad), jnp.float32),
            grid_spec=grid_spec,
            compiler_params=pltpu.CompilerParams(
                dimension_semantics=("parallel", "arbitrary"),
                vmem_limit_bytes=vmem_limit),
            cost_estimate=cost,
        )(prepared["question_weight"], prepared["image_weight"],
          q_p, prepared["w1"], img_p, prepared["b1"],
          prepared["w2"], prepared["b2"])

    try:
        out_padded = _call(True)
    except Exception:
        # pl.Buffered(1) not supported by this jax build -> default buffering.
        out_padded = _call(False)

    return out_padded[:B, :A]


# -----------------------------------------------------------------------------
# Parameter init (mimics nn.Linear's uniform(-1/sqrt(fan_in))) and reference
# -----------------------------------------------------------------------------
def init_params(key, question_dict_size, answer_dict_size, word_feature_size):
    k1, k2, k3, k4 = jax.random.split(key, 4)
    bound1 = 1.0 / math.sqrt(question_dict_size)
    bound2 = 1.0 / math.sqrt(word_feature_size)
    return {
        # Stored transposed relative to PyTorch: (in_features, out_features).
        "w1": jax.random.uniform(k1, (question_dict_size, word_feature_size),
                                 jnp.float32, -bound1, bound1),
        "b1": jax.random.uniform(k2, (1, word_feature_size),
                                 jnp.float32, -bound1, bound1),
        "w2": jax.random.uniform(k3, (word_feature_size, answer_dict_size),
                                 jnp.float32, -bound2, bound2),
        "b2": jax.random.uniform(k4, (1, answer_dict_size),
                                 jnp.float32, -bound2, bound2),
        "question_weight": jnp.array(0.5, jnp.float32),
        "image_weight": jnp.array(0.5, jnp.float32),
    }


def _reference(image, question_encoding, params):
    """Plain-JAX f32 reference mirroring the PyTorch forward."""
    img = image.reshape(image.shape[0], image.shape[2])
    word = question_encoding @ params["w1"] + params["b1"]
    combined = params["question_weight"] * word + params["image_weight"] * img
    return combined @ params["w2"] + params["b2"]


if __name__ == "__main__":
    # Small, deliberately non-aligned shapes: exercises padding, the collapsed
    # (1 x 1) grid and a multi-tile (2 batch x 3 K) grid.
    B = 20
    question_dict_size = 384
    answer_dict_size = 200
    word_feature_size = 160   # image feature dim must equal word_feature_size

    key = jax.random.PRNGKey(0)
    kp, ki, kq = jax.random.split(key, 3)
    params = init_params(kp, question_dict_size, answer_dict_size,
                         word_feature_size)
    image = jax.random.normal(ki, (B, 1, word_feature_size), jnp.float32)
    question_encoding = jax.random.normal(kq, (B, question_dict_size),
                                          jnp.float32)

    ref = _reference(image, question_encoding, params)

    # Production-style config: weights padded/cast once, grid collapses so w1
    # is streamed from HBM exactly once.
    prepared = prepare_params(params)
    out = jax.block_until_ready(
        simple_baseline_net2(image, question_encoding, prepared))
    assert out.shape == (B, answer_dict_size)
    err = float(jnp.max(jnp.abs(out - ref)))
    # bf16 weights/activations on the matmul path -> loosened tolerance.
    assert jnp.allclose(out, ref, atol=5e-2, rtol=5e-2), (
        f"collapsed-grid mismatch vs reference (max abs err {err})")

    # Multi-tile config: grid=(2 batch tiles, 3 K tiles) exercises the
    # K-accumulation pipeline and the pl.when epilogue.
    prepared_small = prepare_params(params, tk=128)
    out2 = jax.block_until_ready(
        simple_baseline_net2(image, question_encoding, prepared_small, tm=16))
    err2 = float(jnp.max(jnp.abs(out2 - ref)))
    assert jnp.allclose(out2, ref, atol=5e-2, rtol=5e-2), (
        f"multi-tile mismatch vs reference (max abs err {err2})")

    print("KERNEL_OK")
</pallas_src>

<mosaic_0001>
module attributes {stable_mosaic.version = 11 : i64} {
  func.func @_baseline_kernel(%arg0: i32, %arg1: i32, %arg2: memref<1x1xf32, #tpu.memory_space<smem>>, %arg3: memref<1x1xf32, #tpu.memory_space<smem>>, %arg4: memref<32x384xbf16, #tpu.memory_space<vmem>>, %arg5: memref<384x256xbf16, #tpu.memory_space<vmem>>, %arg6: memref<32x256xf32, #tpu.memory_space<vmem>>, %arg7: memref<1x256xf32, #tpu.memory_space<vmem>>, %arg8: memref<256x256xbf16, #tpu.memory_space<vmem>>, %arg9: memref<1x256xf32, #tpu.memory_space<vmem>>, %arg10: memref<32x256xf32, #tpu.memory_space<vmem>>, %arg11: memref<32x256xf32, #tpu.memory_space<vmem>>) attributes {dimension_semantics = [#tpu.dimension_semantics<parallel>, #tpu.dimension_semantics<arbitrary>], iteration_bounds = array<i64: 1, 1>, scalar_prefetch = 0 : i64, scratch_operands = 1 : i64, tpu.core_type = #tpu.core_type<tc>, window_params = [{transform_indices = @transform_0, window_bounds = array<i64: 1, 1>}, {transform_indices = @transform_1, window_bounds = array<i64: 1, 1>}, {transform_indices = @transform_2, window_bounds = array<i64: 32, 384>}, {transform_indices = @transform_3, window_bounds = array<i64: 384, 256>}, {transform_indices = @transform_4, window_bounds = array<i64: 32, 256>}, {pipeline_mode = #tpu.pipeline_mode<synchronous>, transform_indices = @transform_5, window_bounds = array<i64: 1, 256>}, {pipeline_mode = #tpu.pipeline_mode<synchronous>, transform_indices = @transform_6, window_bounds = array<i64: 256, 256>}, {pipeline_mode = #tpu.pipeline_mode<synchronous>, transform_indices = @transform_7, window_bounds = array<i64: 1, 256>}, {transform_indices = @transform_8, window_bounds = array<i64: 32, 256>}]} {
    %c0_i32 = arith.constant 0 : i32
    %0 = arith.cmpi eq, %arg1, %c0_i32 : i32
    %1 = arith.extui %0 : i1 to i32
    %c0_i32_0 = arith.constant 0 : i32
    %2 = arith.cmpi ne, %1, %c0_i32_0 : i32
    scf.if %2 {
      %c0_10 = arith.constant 0 : index
      %c0_11 = arith.constant 0 : index
      %12 = vector.load %arg7[%c0_10, %c0_11] : memref<1x256xf32, #tpu.memory_space<vmem>>, vector<1x256xf32>
      %13 = vector.shape_cast %12 : vector<1x256xf32> to vector<1x256xf32>
      %14 = vector.broadcast %13 : vector<1x256xf32> to vector<32x256xf32>
      %c0_12 = arith.constant 0 : index
      %c0_13 = arith.constant 0 : index
      %15 = vector.load %arg11[%c0_12, %c0_13] : memref<32x256xf32, #tpu.memory_space<vmem>>, vector<32x256xf32>
      tpu.vector_store %arg11[%c0_12, %c0_13], %14 {strides = array<i32>} : memref<32x256xf32, #tpu.memory_space<vmem>>, vector<32x256xf32>,
    } else {
    }
    %c0 = arith.constant 0 : index
    %c0_1 = arith.constant 0 : index
    %3 = vector.load %arg11[%c0, %c0_1] : memref<32x256xf32, #tpu.memory_space<vmem>>, vector<32x256xf32>
    %c0_2 = arith.constant 0 : index
    %c0_3 = arith.constant 0 : index
    %4 = vector.load %arg4[%c0_2, %c0_3] : memref<32x384xbf16, #tpu.memory_space<vmem>>, vector<32x384xbf16>
    %c0_4 = arith.constant 0 : index
    %c0_5 = arith.constant 0 : index
    %5 = vector.load %arg5[%c0_4, %c0_5] : memref<384x256xbf16, #tpu.memory_space<vmem>>, vector<384x256xbf16>
    %cst = arith.constant dense<0.000000e+00> : vector<32x256xf32>
    %6 = tpu.matmul %4, %5, %cst {dimension_numbers = #tpu.dot_dimension_numbers<[1], [0], [0], [1], [0, 0, 1, 1], [], []>} : vector<32x384xbf16>, vector<384x256xbf16>, vector<32x256xf32> -> vector<32x256xf32>
    %7 = arith.addf %3, %6 : vector<32x256xf32>
    %c0_6 = arith.constant 0 : index
    %c0_7 = arith.constant 0 : index
    %8 = vector.load %arg11[%c0_6, %c0_7] : memref<32x256xf32, #tpu.memory_space<vmem>>, vector<32x256xf32>
    tpu.vector_store %arg11[%c0_6, %c0_7], %7 {strides = array<i32>} : memref<32x256xf32, #tpu.memory_space<vmem>>, vector<32x256xf32>,
    %c0_i32_8 = arith.constant 0 : i32
    %9 = arith.cmpi eq, %arg1, %c0_i32_8 : i32
    %10 = arith.extui %9 : i1 to i32
    %c0_i32_9 = arith.constant 0 : i32
    %11 = arith.cmpi ne, %10, %c0_i32_9 : i32
    scf.if %11 {
      %c0_10 = arith.constant 0 : index
      %c0_11 = arith.constant 0 : index
      %12 = memref.load %arg2[%c0_10, %c0_11] : memref<1x1xf32, #tpu.memory_space<smem>>
      %c0_12 = arith.constant 0 : index
      %c0_13 = arith.constant 0 : index
      %13 = vector.load %arg11[%c0_12, %c0_13] : memref<32x256xf32, #tpu.memory_space<vmem>>, vector<32x256xf32>
      %14 = vector.broadcast %12 : f32 to vector<32x256xf32>
      %15 = arith.mulf %14, %13 : vector<32x256xf32>
      %c0_14 = arith.constant 0 : index
      %c0_15 = arith.constant 0 : index
      %16 = memref.load %arg3[%c0_14, %c0_15] : memref<1x1xf32, #tpu.memory_space<smem>>
      %c0_16 = arith.constant 0 : index
      %c0_17 = arith.constant 0 : index
      %17 = vector.load %arg6[%c0_16, %c0_17] : memref<32x256xf32, #tpu.memory_space<vmem>>, vector<32x256xf32>
      %18 = vector.broadcast %16 : f32 to vector<32x256xf32>
      %19 = arith.mulf %18, %17 : vector<32x256xf32>
      %20 = arith.addf %15, %19 : vector<32x256xf32>
      %21 = arith.truncf %20 : vector<32x256xf32> to vector<32x256xbf16>
      %c0_18 = arith.constant 0 : index
      %c0_19 = arith.constant 0 : index
      %22 = vector.load %arg8[%c0_18, %c0_19] : memref<256x256xbf16, #tpu.memory_space<vmem>>, vector<256x256xbf16>
      %cst_20 = arith.constant dense<0.000000e+00> : vector<32x256xf32>
      %23 = tpu.matmul %21, %22, %cst_20 {dimension_numbers = #tpu.dot_dimension_numbers<[1], [0], [0], [1], [0, 0, 1, 1], [], []>} : vector<32x256xbf16>, vector<256x256xbf16>, vector<32x256xf32> -> vector<32x256xf32>
      %c0_21 = arith.constant 0 : index
      %c0_22 = arith.constant 0 : index
      %24 = vector.load %arg9[%c0_21, %c0_22] : memref<1x256xf32, #tpu.memory_space<vmem>>, vector<1x256xf32>
      %25 = vector.broadcast %24 : vector<1x256xf32> to vector<32x256xf32>
      %26 = arith.addf %23, %25 : vector<32x256xf32>
      %c0_23 = arith.constant 0 : index
      %c0_24 = arith.constant 0 : index
      %27 = vector.load %arg10[%c0_23, %c0_24] : memref<32x256xf32, #tpu.memory_space<vmem>>, vector<32x256xf32>
      tpu.vector_store %arg10[%c0_23, %c0_24], %26 {strides = array<i32>} : memref<32x256xf32, #tpu.memory_space<vmem>>, vector<32x256xf32>,
    } else {
    }
    return
  }
  func.func @transform_0(%arg0: i32, %arg1: i32) -> (i32, i32) {
    %c0_i32 = arith.constant 0 : i32
    %c0_i32_0 = arith.constant 0 : i32
    %c0_i32_1 = arith.constant 0 : i32
    return %c0_i32, %c0_i32_0 : i32, i32
  }
  func.func @transform_1(%arg0: i32, %arg1: i32) -> (i32, i32) {
    %c0_i32 = arith.constant 0 : i32
    %c0_i32_0 = arith.constant 0 : i32
    %c0_i32_1 = arith.constant 0 : i32
    return %c0_i32, %c0_i32_0 : i32, i32
  }
  func.func @transform_2(%arg0: i32, %arg1: i32) -> (i32, i32) {
    %c0_i32 = arith.constant 0 : i32
    return %arg0, %arg1 : i32, i32
  }
  func.func @transform_3(%arg0: i32, %arg1: i32) -> (i32, i32) {
    %c0_i32 = arith.constant 0 : i32
    %c0_i32_0 = arith.constant 0 : i32
    return %arg1, %c0_i32 : i32, i32
  }
  func.func @transform_4(%arg0: i32, %arg1: i32) -> (i32, i32) {
    %c0_i32 = arith.constant 0 : i32
    %c0_i32_0 = arith.constant 0 : i32
    return %arg0, %c0_i32 : i32, i32
  }
  func.func @transform_5(%arg0: i32, %arg1: i32) -> (i32, i32) {
    %c0_i32 = arith.constant 0 : i32
    %c0_i32_0 = arith.constant 0 : i32
    %c0_i32_1 = arith.constant 0 : i32
    return %c0_i32, %c0_i32_0 : i32, i32
  }
  func.func @transform_6(%arg0: i32, %arg1: i32) -> (i32, i32) {
    %c0_i32 = arith.constant 0 : i32
    %c0_i32_0 = arith.constant 0 : i32
    %c0_i32_1 = arith.constant 0 : i32
    return %c0_i32, %c0_i32_0 : i32, i32
  }
  func.func @transform_7(%arg0: i32, %arg1: i32) -> (i32, i32) {
    %c0_i32 = arith.constant 0 : i32
    %c0_i32_0 = arith.constant 0 : i32
    %c0_i32_1 = arith.constant 0 : i32
    return %c0_i32, %c0_i32_0 : i32, i32
  }
  func.func @transform_8(%arg0: i32, %arg1: i32) -> (i32, i32) {
    %c0_i32 = arith.constant 0 : i32
    %c0_i32_0 = arith.constant 0 : i32
    return %arg0, %c0_i32 : i32, i32
  }
}

module attributes {stable_mosaic.version = 11 : i64} {
  func.func @_baseline_kernel(%arg0: i32, %arg1: i32, %arg2: memref<1x1xf32, #tpu.memory_space<smem>>, %arg3: memref<1x1xf32, #tpu.memory_space<smem>>, %arg4: memref<32x384xbf16, #tpu.memory_space<vmem>>, %arg5: memref<384x256xbf16, #tpu.memory_space<vmem>>, %arg6: memref<32x256xf32, #tpu.memory_space<vmem>>, %arg7: memref<1x256xf32, #tpu.memory_space<vmem>>, %arg8: memref<256x256xbf16, #tpu.memory_space<vmem>>, %arg9: memref<1x256xf32, #tpu.memory_space<vmem>>, %arg10: memref<32x256xf32, #tpu.memory_space<vmem>>, %arg11: memref<32x256xf32, #tpu.memory_space<vmem>>) attributes {dimension_semantics = [#tpu.dimension_semantics<parallel>, #tpu.dimension_semantics<arbitrary>], iteration_bounds = array<i64: 1, 1>, scalar_prefetch = 0 : i64, scratch_operands = 1 : i64, tpu.core_type = #tpu.core_type<tc>, window_params = [{transform_indices = @transform_0, window_bounds = array<i64: 1, 1>}, {transform_indices = @transform_1, window_bounds = array<i64: 1, 1>}, {transform_indices = @transform_2, window_bounds = array<i64: 32, 384>}, {transform_indices = @transform_3, window_bounds = array<i64: 384, 256>}, {transform_indices = @transform_4, window_bounds = array<i64: 32, 256>}, {pipeline_mode = #tpu.pipeline_mode<synchronous>, transform_indices = @transform_5, window_bounds = array<i64: 1, 256>}, {pipeline_mode = #tpu.pipeline_mode<synchronous>, transform_indices = @transform_6, window_bounds = array<i64: 256, 256>}, {pipeline_mode = #tpu.pipeline_mode<synchronous>, transform_indices = @transform_7, window_bounds = array<i64: 1, 256>}, {transform_indices = @transform_8, window_bounds = array<i64: 32, 256>}]} {
    %c0_i32 = arith.constant 0 : i32
    %0 = arith.cmpi eq, %arg1, %c0_i32 : i32
    %1 = arith.extui %0 : i1 to i32
    %c0_i32_0 = arith.constant 0 : i32
    %2 = arith.cmpi ne, %1, %c0_i32_0 : i32
    scf.if %2 {
      %c0_10 = arith.constant 0 : index
      %c0_11 = arith.constant 0 : index
      %12 = vector.load %arg7[%c0_10, %c0_11] : memref<1x256xf32, #tpu.memory_space<vmem>>, vector<1x256xf32>
      %13 = vector.shape_cast %12 : vector<1x256xf32> to vector<1x256xf32>
      %14 = vector.broadcast %13 : vector<1x256xf32> to vector<32x256xf32>
      %c0_12 = arith.constant 0 : index
      %c0_13 = arith.constant 0 : index
      %15 = vector.load %arg11[%c0_12, %c0_13] : memref<32x256xf32, #tpu.memory_space<vmem>>, vector<32x256xf32>
      tpu.vector_store %arg11[%c0_12, %c0_13], %14 {strides = array<i32>} : memref<32x256xf32, #tpu.memory_space<vmem>>, vector<32x256xf32>,
    } else {
    }
    %c0 = arith.constant 0 : index
    %c0_1 = arith.constant 0 : index
    %3 = vector.load %arg11[%c0, %c0_1] : memref<32x256xf32, #tpu.memory_space<vmem>>, vector<32x256xf32>
    %c0_2 = arith.constant 0 : index
    %c0_3 = arith.constant 0 : index
    %4 = vector.load %arg4[%c0_2, %c0_3] : memref<32x384xbf16, #tpu.memory_space<vmem>>, vector<32x384xbf16>
    %c0_4 = arith.constant 0 : index
    %c0_5 = arith.constant 0 : index
    %5 = vector.load %arg5[%c0_4, %c0_5] : memref<384x256xbf16, #tpu.memory_space<vmem>>, vector<384x256xbf16>
    %cst = arith.constant dense<0.000000e+00> : vector<32x256xf32>
    %6 = tpu.matmul %4, %5, %cst {dimension_numbers = #tpu.dot_dimension_numbers<[1], [0], [0], [1], [0, 0, 1, 1], [], []>} : vector<32x384xbf16>, vector<384x256xbf16>, vector<32x256xf32> -> vector<32x256xf32>
    %7 = arith.addf %3, %6 : vector<32x256xf32>
    %c0_6 = arith.constant 0 : index
    %c0_7 = arith.constant 0 : index
    %8 = vector.load %arg11[%c0_6, %c0_7] : memref<32x256xf32, #tpu.memory_space<vmem>>, vector<32x256xf32>
    tpu.vector_store %arg11[%c0_6, %c0_7], %7 {strides = array<i32>} : memref<32x256xf32, #tpu.memory_space<vmem>>, vector<32x256xf32>,
    %c0_i32_8 = arith.constant 0 : i32
    %9 = arith.cmpi eq, %arg1, %c0_i32_8 : i32
    %10 = arith.extui %9 : i1 to i32
    %c0_i32_9 = arith.constant 0 : i32
    %11 = arith.cmpi ne, %10, %c0_i32_9 : i32
    scf.if %11 {
      %c0_10 = arith.constant 0 : index
      %c0_11 = arith.constant 0 : index
      %12 = memref.load %arg2[%c0_10, %c0_11] : memref<1x1xf32, #tpu.memory_space<smem>>
      %c0_12 = arith.constant 0 : index
      %c0_13 = arith.constant 0 : index
      %13 = vector.load %arg11[%c0_12, %c0_13] : memref<32x256xf32, #tpu.memory_space<vmem>>, vector<32x256xf32>
      %14 = vector.broadcast %12 : f32 to vector<32x256xf32>
      %15 = arith.mulf %14, %13 : vector<32x256xf32>
      %c0_14 = arith.constant 0 : index
      %c0_15 = arith.constant 0 : index
      %16 = memref.load %arg3[%c0_14, %c0_15] : memref<1x1xf32, #tpu.memory_space<smem>>
      %c0_16 = arith.constant 0 : index
      %c0_17 = arith.constant 0 : index
      %17 = vector.load %arg6[%c0_16, %c0_17] : memref<32x256xf32, #tpu.memory_space<vmem>>, vector<32x256xf32>
      %18 = vector.broadcast %16 : f32 to vector<32x256xf32>
      %19 = arith.mulf %18, %17 : vector<32x256xf32>
      %20 = arith.addf %15, %19 : vector<32x256xf32>
      %21 = arith.truncf %20 : vector<32x256xf32> to vector<32x256xbf16>
      %c0_18 = arith.constant 0 : index
      %c0_19 = arith.constant 0 : index
      %22 = vector.load %arg8[%c0_18, %c0_19] : memref<256x256xbf16, #tpu.memory_space<vmem>>, vector<256x256xbf16>
      %cst_20 = arith.constant dense<0.000000e+00> : vector<32x256xf32>
      %23 = tpu.matmul %21, %22, %cst_20 {dimension_numbers = #tpu.dot_dimension_numbers<[1], [0], [0], [1], [0, 0, 1, 1], [], []>} : vector<32x256xbf16>, vector<256x256xbf16>, vector<32x256xf32> -> vector<32x256xf32>
      %c0_21 = arith.constant 0 : index
      %c0_22 = arith.constant 0 : index
      %24 = vector.load %arg9[%c0_21, %c0_22] : memref<1x256xf32, #tpu.memory_space<vmem>>, vector<1x256xf32>
      %25 = vector.broadcast %24 : vector<1x256xf32> to vector<32x256xf32>
      %26 = arith.addf %23, %25 : vector<32x256xf32>
      %c0_23 = arith.constant 0 : index
      %c0_24 = arith.constant 0 : index
      %27 = vector.load %arg10[%c0_23, %c0_24] : memref<32x256xf32, #tpu.memory_space<vmem>>, vector<32x256xf32>
      tpu.vector_store %arg10[%c0_23, %c0_24], %26 {strides = array<i32>} : memref<32x256xf32, #tpu.memory_space<vmem>>, vector<32x256xf32>,
    } else {
    }
    return
  }
  func.func @transform_0(%arg0: i32, %arg1: i32) -> (i32, i32) {
    %c0_i32 = arith.constant 0 : i32
    %c0_i32_0 = arith.constant 0 : i32
    %c0_i32_1 = arith.constant 0 : i32
    return %c0_i32, %c0_i32_0 : i32, i32
  }
  func.func @transform_1(%arg0: i32, %arg1: i32) -> (i32, i32) {
    %c0_i32 = arith.constant 0 : i32
    %c0_i32_0 = arith.constant 0 : i32
    %c0_i32_1 = arith.constant 0 : i32
    return %c0_i32, %c0_i32_0 : i32, i32
  }
  func.func @transform_2(%arg0: i32, %arg1: i32) -> (i32, i32) {
    %c0_i32 = arith.constant 0 : i32
    return %arg0, %arg1 : i32, i32
  }
  func.func @transform_3(%arg0: i32, %arg1: i32) -> (i32, i32) {
    %c0_i32 = arith.constant 0 : i32
    %c0_i32_0 = arith.constant 0 : i32
    return %arg1, %c0_i32 : i32, i32
  }
  func.func @transform_4(%arg0: i32, %arg1: i32) -> (i32, i32) {
    %c0_i32 = arith.constant 0 : i32
    %c0_i32_0 = arith.constant 0 : i32
    return %arg0, %c0_i32 : i32, i32
  }
  func.func @transform_5(%arg0: i32, %arg1: i32) -> (i32, i32) {
    %c0_i32 = arith.constant 0 : i32
    %c0_i32_0 = arith.constant 0 : i32
    %c0_i32_1 = arith.constant 0 : i32
    return %c0_i32, %c0_i32_0 : i32, i32
  }
  func.func @transform_6(%arg0: i32, %arg1: i32) -> (i32, i32) {
    %c0_i32 = arith.constant 0 : i32
    %c0_i32_0 = arith.constant 0 : i32
    %c0_i32_1 = arith.constant 0 : i32
    return %c0_i32, %c0_i32_0 : i32, i32
  }
  func.func @transform_7(%arg0: i32, %arg1: i32) -> (i32, i32) {
    %c0_i32 = arith.constant 0 : i32
    %c0_i32_0 = arith.constant 0 : i32
    %c0_i32_1 = arith.constant 0 : i32
    return %c0_i32, %c0_i32_0 : i32, i32
  }
  func.func @transform_8(%arg0: i32, %arg1: i32) -> (i32, i32) {
    %c0_i32 = arith.constant 0 : i32
    %c0_i32_0 = arith.constant 0 : i32
    return %arg0, %c0_i32 : i32, i32
  }
}

</mosaic_0001>

<bundles_post_ra>
// kernel: tpu_custom_call.1
= control target key start
LH: loop header
LB: loop body
LE: loop exit
PB: predicated region body
PF: predicated region fallthrough
CT: control target
= control target key end

     0   :  { %15 = vsyncpa [#allocation6], 0  ;;  %s1410_s0 = inlined_call_operand.<no memory space> [shape: f32[1,1], index: 0, kind: input, shape index: {}]   ;;  %s1411_s1 = inlined_call_operand.<no memory space> [shape: f32[1,1], index: 1, kind: input, shape index: {}]   ;;  %s1412_s2 = inlined_call_operand.hbm [shape: bf16[32,384], index: 2, kind: input, shape index: {}]   ;;  %s1413_s3 = inlined_call_operand.hbm [shape: bf16[384,256], index: 3, kind: input, shape index: {}]   ;;  %s1414_s4 = inlined_call_operand.hbm [shape: f32[32,256], index: 4, kind: input, shape index: {}]   ;;  %s1415_s5 = inlined_call_operand.vmem [shape: f32[1,256], index: 5, kind: input, shape index: {}]   ;;  %s1416_s6 = inlined_call_operand.hbm [shape: bf16[256,256], index: 6, kind: input, shape index: {}]   ;;  %s1417_s7 = inlined_call_operand.vmem [shape: f32[1,256], index: 7, kind: input, shape index: {}]   ;;  %s1418_s8 = inlined_call_operand.hbm [shape: f32[32,256], index: 8, kind: output, shape index: {}]  }
   0x1   :  { %16 = vsyncpa [#allocation9], 0 }
   0x2   :  { %17 = vsyncpa [#allocation12], 0 }
   0x3   :  { %18 = vsyncpa [#allocation7], 0  ;;  %s1257_s27 = smov [#allocation8]   ;;  %s1139_s9 = scalar_lea.hbm %s1413_s3, 6144 }
   0x4   :  { %s40_s28 = sshll.u32 %s1257_s27, 4  ;;  %p1140_p0 = scmp.ne.s32.totalorder %s1413_s3, %s1139_s9  ;;  %s41_s28 = int_to_ptr.vmem [resolvable:$true] %s40_s28 }
   0x5   :  { %p1143_p1 = scmp.lt.u32.totalorder %s1139_s9, %s1413_s3 }
   0x7   :  { %p1145_p2 = pnand %p1143_p1, %p1140_p0 }
   0x9   :  { %1148 = shalt.err (!%p1145_p2)
}
   0xa   :  { %s1149_s14 = scalar_lea.vmem %s41_s28, 6144  ;;  %p1154_p4 = scmp.lt.s32.totalorder %s41_s28, %s41_s28 }
   0xb   :  { %p1150_p3 = scmp.ne.s32.totalorder %s41_s28, %s1149_s14  ;;  %p1155_p5 = scmp.lt.s32.totalorder %s1149_s14, %s1149_s14 }
   0xd   :  { %p1156_p6 = por %p1155_p5, %p1154_p4 }
   0xf   :  { %p1157_p7 = pnand %p1156_p6, %p1150_p3 }
  0x11   :  { %1160 = shalt.err (!%p1157_p7)
}
  0x12   :  { %s1258_s15 = smov 128   ;;  %s1259_s16 = smov 8  }
  0x13   :  { %46 = dma.hbm_to_vmem [thread:$0]  %s1413_s3, 6144, %s41_s28, [#allocation9], %s1258_s15, %s1258_s15, %s1259_s16  }
  0x14   :  { %s1260_s19 = smov [#allocation5]   ;;  %s1161_s23 = scalar_lea.hbm %s1412_s2, 768 }
  0x15   :  { %s28_s20 = sshll.u32 %s1260_s19, 4  ;;  %p1162_p8 = scmp.ne.s32.totalorder %s1412_s2, %s1161_s23  ;;  %s29_s20 = int_to_ptr.vmem [resolvable:$true] %s28_s20 }
  0x16   :  { %p1165_p9 = scmp.lt.u32.totalorder %s1161_s23, %s1412_s2 }
  0x18   :  { %p1167_p10 = pnand %p1165_p9, %p1162_p8 }
  0x1a   :  { %1170 = shalt.err (!%p1167_p10)
}
  0x1b   :  { %s1171_s29 = scalar_lea.vmem %s29_s20, 768  ;;  %p1176_p12 = scmp.lt.s32.totalorder %s29_s20, %s29_s20 }
  0x1c   :  { %p1172_p11 = scmp.ne.s32.totalorder %s29_s20, %s1171_s29  ;;  %p1177_p13 = scmp.lt.s32.totalorder %s1171_s29, %s1171_s29 }
  0x1e   :  { %p1178_p0 = por %p1177_p13, %p1176_p12 }
  0x20   :  { %p1179_p1 = pnand %p1178_p0, %p1172_p11 }
  0x22   :  { %1182 = shalt.err (!%p1179_p1)
}
  0x23   :  { %s1261_s3 = smov 192   ;;  %s1262_s28 = smov 12  }
  0x24   :  { %34 = dma.hbm_to_vmem [thread:$0]  %s1412_s2, 768, %s29_s20, [#allocation6], %s1261_s3, %s1261_s3, %s1262_s28  }
  0x25   :  { %s1263_s10 = smov [#allocation10]   ;;  %s1183_s14 = scalar_lea.hbm %s1414_s4, 1024 }
  0x26   :  { %s52_s11 = sshll.u32 %s1263_s10, 4  ;;  %p1184_p2 = scmp.ne.s32.totalorder %s1414_s4, %s1183_s14  ;;  %s53_s11 = int_to_ptr.vmem [resolvable:$true] %s52_s11 }
  0x27   :  { %p1187_p3 = scmp.lt.u32.totalorder %s1183_s14, %s1414_s4 }
  0x29   :  { %p1189_p4 = pnand %p1187_p3, %p1184_p2 }
  0x2b   :  { %1192 = shalt.err (!%p1189_p4)
}
  0x2c   :  { %s1193_s22 = scalar_lea.vmem %s53_s11, 1024  ;;  %p1198_p6 = scmp.lt.s32.totalorder %s53_s11, %s53_s11 }
  0x2d   :  { %p1194_p5 = scmp.ne.s32.totalorder %s53_s11, %s1193_s22  ;;  %p1199_p7 = scmp.lt.s32.totalorder %s1193_s22, %s1193_s22 }
  0x2f   :  { %p1200_p8 = por %p1199_p7, %p1198_p6 }
  0x31   :  { %p1201_p9 = pnand %p1200_p8, %p1194_p5 }
  0x33   :  { %1204 = shalt.err (!%p1201_p9)
}
  0x34   :  { %s1264_s2 = smov 256   ;;  %s1265_s20 = smov 16  }
  0x35   :  { %58 = dma.hbm_to_vmem [thread:$0]  %s1414_s4, 1024, %s53_s11, [#allocation9], %s1264_s2, %s1264_s2, %s1265_s20  }
  0x36   :  { %s1266_s25 = smov [#allocation11]   ;;  %s1205_s3 = scalar_lea.hbm %s1416_s6, 4096 }
  0x37   :  { %s66_s26 = sshll.u32 %s1266_s25, 4  ;;  %p1206_p10 = scmp.ne.s32.totalorder %s1416_s6, %s1205_s3  ;;  %s67_s26 = int_to_ptr.vmem [resolvable:$true] %s66_s26 }
  0x38   :  { %p1209_p11 = scmp.lt.u32.totalorder %s1205_s3, %s1416_s6 }
  0x3a   :  { %p1211_p12 = pnand %p1209_p11, %p1206_p10 }
  0x3c   :  { %1214 = shalt.err (!%p1211_p12)
}
  0x3d   :  { %s1215_s12 = scalar_lea.vmem %s67_s26, 4096  ;;  %p1220_p0 = scmp.lt.s32.totalorder %s67_s26, %s67_s26 }
  0x3e   :  { %p1216_p13 = scmp.ne.s32.totalorder %s67_s26, %s1215_s12  ;;  %p1221_p1 = scmp.lt.s32.totalorder %s1215_s12, %s1215_s12 }
  0x40   :  { %p1222_p2 = por %p1221_p1, %p1220_p0 }
  0x42   :  { %p1223_p3 = pnand %p1222_p2, %p1216_p13 }
  0x44   :  { %1226 = shalt.err (!%p1223_p3)
}
  0x45   :  { %72 = dma.hbm_to_vmem [thread:$0]  %s1416_s6, 4096, %s67_s26, [#allocation12], %s1258_s15, %s1258_s15, %s1259_s16  }
  0x46   :  { %1249 = dma.done.wait [#allocation6], 768  }
  0x47   :  { %1250 = vsyncadd [#allocation6], 4294966528 }
  0x48   :  { %1251 = dma.done.wait [#allocation9], 7168  }
  0x49   :  { %1252 = vsyncadd [#allocation9], 4294960128 }
  0x4a   :  { %1253 = dma.done.wait [#allocation12], 4096  }
  0x4b   :  { %1254 = vsyncadd [#allocation12], 4294963200  ;;  %v1011_v0 = vld [vmem:[#allocation8 + $0x4] ss:$8 sps:$4 sm:$0xff]   ;;  %v1013_v1 = vld [vmem:[#allocation8] ss:$8 sps:$4 sm:$0xff]  }
  0x4c   :  { %448 = vmatprep.subr.bf16.mxu0 %v1011_v0  ;;  %v1014_v2 = vld [vmem:[#allocation8 + $0x14] ss:$8 sps:$4 sm:$0xff]   ;;  %v1016_v3 = vld [vmem:[#allocation8 + $0x10] ss:$8 sps:$4 sm:$0xff]   ;;  %v1017_v4 = vld [vmem:[#allocation8 + $0x24] ss:$8 sps:$4 sm:$0xff]  }
  0x4d   :  { %449 = vmatpush1.bf16.msra.mxu0 %v1013_v1  ;;  %v1019_v5 = vld [vmem:[#allocation8 + $0x20] ss:$8 sps:$4 sm:$0xff]   ;;  %v1020_v6 = vld [vmem:[#allocation8 + $0x34] ss:$8 sps:$4 sm:$0xff]   ;;  %v1022_v7 = vld [vmem:[#allocation8 + $0x30] ss:$8 sps:$4 sm:$0xff]  }
  0x4e   :  { %450 = vmatprep.subr.bf16.mxu0 %v1014_v2  ;;  %v1023_v8 = vld [vmem:[#allocation8 + $0x44] ss:$8 sps:$4 sm:$0xff]   ;;  %v1025_v9 = vld [vmem:[#allocation8 + $0x40] ss:$8 sps:$4 sm:$0xff]   ;;  %v1026_v10 = vld [vmem:[#allocation8 + $0x54] ss:$8 sps:$4 sm:$0xff]  }
  0x4f   :  { %v1028_v11 = vld [vmem:[#allocation8 + $0x50] ss:$8 sps:$4 sm:$0xff]   ;;  %v1029_v12 = vld [vmem:[#allocation8 + $0x64] ss:$8 sps:$4 sm:$0xff]   ;;  %v1061_v13 = vld [vmem:[#allocation5 + $0x4] ss:$12 sps:$4 sm:$0xff]  }
  0x50   :  { %v1031_v14 = vld [vmem:[#allocation8 + $0x60] ss:$8 sps:$4 sm:$0xff]   ;;  %v1032_v15 = vld [vmem:[#allocation8 + $0x74] ss:$8 sps:$4 sm:$0xff]   ;;  %480 = vmatprep.mubr.bf16.mxu0 %v1061_v13  ;;  %v1034_v16 = vld [vmem:[#allocation8 + $0x70] ss:$8 sps:$4 sm:$0xff]  }
  0x51   :  { %451 = vmatpush1.bf16.msra.mxu0 %v1016_v3  ;;  %v1035_v17 = vld [vmem:[#allocation8 + $0x84] ss:$8 sps:$4 sm:$0xff]   ;;  %v1037_v18 = vld [vmem:[#allocation8 + $0x80] ss:$8 sps:$4 sm:$0xff]   ;;  %v1038_v19 = vld [vmem:[#allocation8 + $0x94] ss:$8 sps:$4 sm:$0xff]  }
  0x52   :  { %452 = vmatprep.subr.bf16.mxu0 %v1017_v4  ;;  %v1040_v20 = vld [vmem:[#allocation8 + $0x90] ss:$8 sps:$4 sm:$0xff]   ;;  %v1041_v21 = vld [vmem:[#allocation8 + $0xa4] ss:$8 sps:$4 sm:$0xff]   ;;  %v1093_v23 = vld [vmem:[#allocation11] ss:$8 sps:$4 sm:$0xff]  }
  0x53   :  { %v1091_v22 = vld [vmem:[#allocation11 + $0x4] ss:$8 sps:$4 sm:$0xff]   ;;  %v1094_v24 = vld [vmem:[#allocation11 + $0x14] ss:$8 sps:$4 sm:$0xff]   ;;  %v1043_v25 = vld [vmem:[#allocation8 + $0xa0] ss:$8 sps:$4 sm:$0xff]  }
  0x54   :  { %825 = vmatprep.subr.bf16.mxu1 %v1091_v22  ;;  %v1044_v26 = vld [vmem:[#allocation8 + $0xb4] ss:$8 sps:$4 sm:$0xff]   ;;  %v1096_v27 = vld [vmem:[#allocation11 + $0x10] ss:$8 sps:$4 sm:$0xff]   ;;  %v1097_v28 = vld [vmem:[#allocation11 + $0x24] ss:$8 sps:$4 sm:$0xff]  }
  0x55   :  { %453 = vmatpush1.bf16.msra.mxu0 %v1019_v5  ;;  %826 = vmatpush1.bf16.msra.mxu1 %v1093_v23  ;;  %v1046_v29 = vld [vmem:[#allocation8 + $0xb0] ss:$8 sps:$4 sm:$0xff]   ;;  %v1047_v30 = vld [vmem:[#allocation8 + $0xc4] ss:$8 sps:$4 sm:$0xff]   ;;  %v1099_v31 = vld [vmem:[#allocation11 + $0x20] ss:$8 sps:$4 sm:$0xff]   ;;  %v94_v23 = vlaneseq }
  0x56   :  { %454 = vmatprep.subr.bf16.mxu0 %v1020_v6  ;;  %827 = vmatprep.subr.bf16.mxu1 %v1094_v24  ;;  %v1100_v32 = vld [vmem:[#allocation11 + $0x34] ss:$8 sps:$4 sm:$0xff]   ;;  %v1049_v33 = vld [vmem:[#allocation8 + $0xc0] ss:$8 sps:$4 sm:$0xff]   ;;  %v1102_v35 = vld [vmem:[#allocation11 + $0x30] ss:$8 sps:$4 sm:$0xff]  }
  0x57   :  { %v1050_v34 = vld [vmem:[#allocation8 + $0xd4] ss:$8 sps:$4 sm:$0xff]   ;;  %v1103_v36 = vld [vmem:[#allocation11 + $0x44] ss:$8 sps:$4 sm:$0xff]   ;;  %v1052_v37 = vld [vmem:[#allocation8 + $0xd0] ss:$8 sps:$4 sm:$0xff]  }
  0x58   :  { %v1053_v38 = vld [vmem:[#allocation8 + $0xe4] ss:$8 sps:$4 sm:$0xff]   ;;  %v1105_v39 = vld [vmem:[#allocation11 + $0x40] ss:$8 sps:$4 sm:$0xff]   ;;  %v1106_v40 = vld [vmem:[#allocation11 + $0x54] ss:$8 sps:$4 sm:$0xff]  }
  0x59   :  { %455 = vmatpush1.bf16.msra.mxu0 %v1022_v7  ;;  %828 = vmatpush1.bf16.msra.mxu1 %v1096_v27  ;;  %v1055_v41 = vld [vmem:[#allocation8 + $0xe0] ss:$8 sps:$4 sm:$0xff]   ;;  %v1056_v42 = vld [vmem:[#allocation8 + $0xf4] ss:$8 sps:$4 sm:$0xff]   ;;  %v1108_v43 = vld [vmem:[#allocation11 + $0x50] ss:$8 sps:$4 sm:$0xff]  }
  0x5a   :  { %456 = vmatprep.subr.bf16.mxu0 %v1023_v8  ;;  %829 = vmatprep.subr.bf16.mxu1 %v1097_v28  ;;  %v1109_v44 = vld [vmem:[#allocation11 + $0x64] ss:$8 sps:$4 sm:$0xff]   ;;  %v1058_v45 = vld [vmem:[#allocation8 + $0xf0] ss:$8 sps:$4 sm:$0xff]   ;;  %v1111_v47 = vld [vmem:[#allocation11 + $0x60] ss:$8 sps:$4 sm:$0xff]  }
  0x5b   :  { %v1064_v46 = vld [vmem:[#allocation8 + $0x104] ss:$8 sps:$4 sm:$0xff]   ;;  %v1112_v48 = vld [vmem:[#allocation11 + $0x74] ss:$8 sps:$4 sm:$0xff]   ;;  %v1062_v50 = vld [vmem:[#allocation8 + $0x100] ss:$8 sps:$4 sm:$0xff]  }
  0x5c   :  { %v1059_v49 = vld [vmem:[#allocation5] ss:$12 sps:$4 sm:$0xff]   ;;  %v1080_v51 = vld [vmem:[#allocation5 + $0x1c] ss:$12 sps:$4 sm:$0xff]   ;;  %v1117_v57 = vld [vmem:[#allocation11 + $0x80] ss:$8 sps:$4 sm:$0xff]  }
  0x5d   :  { %457 = vmatpush1.bf16.msra.mxu0 %v1025_v9  ;;  %830 = vmatpush1.bf16.msra.mxu1 %v1099_v31  ;;  %v1067_v52 = vld [vmem:[#allocation8 + $0x114] ss:$8 sps:$4 sm:$0xff]   ;;  %v1114_v53 = vld [vmem:[#allocation11 + $0x70] ss:$8 sps:$4 sm:$0xff]   ;;  %v1115_v54 = vld [vmem:[#allocation11 + $0x84] ss:$8 sps:$4 sm:$0xff]   ;;  %v582_v31 = vstv %s1410_s0 }
  0x5e   :  { %458 = vmatprep.subr.bf16.mxu0 %v1026_v10  ;;  %831 = vmatprep.subr.bf16.mxu1 %v1100_v32  ;;  %v1065_v55 = vld [vmem:[#allocation8 + $0x110] ss:$8 sps:$4 sm:$0xff]   ;;  %v1070_v56 = vld [vmem:[#allocation8 + $0x124] ss:$8 sps:$4 sm:$0xff]   ;;  %v1118_v58 = vld [vmem:[#allocation11 + $0x94] ss:$8 sps:$4 sm:$0xff]  }
  0x5f   :  { %v1082_v59 = vld [vmem:[#allocation5 + $0x18] ss:$12 sps:$4 sm:$0xff]   ;;  %v1120_v62 = vld [vmem:[#allocation11 + $0x90] ss:$8 sps:$4 sm:$0xff]   ;;  %v1121_v63 = vld [vmem:[#allocation11 + $0xa4] ss:$8 sps:$4 sm:$0xff]  }
  0x60   :  { %v1068_v60 = vld [vmem:[#allocation8 + $0x120] ss:$8 sps:$4 sm:$0xff]   ;;  %v1073_v61 = vld [vmem:[#allocation8 + $0x134] ss:$8 sps:$4 sm:$0xff]   ;;  %v1071_v0 = vld [vmem:[#allocation8 + $0x130] ss:$8 sps:$4 sm:$0xff]  }
  0x61   :  { %459 = vmatpush1.bf16.msra.mxu0 %v1028_v11  ;;  %832 = vmatpush1.bf16.msra.mxu1 %v1102_v35  ;;  %v1267_v1 = vmov 0   ;;  %v1076_v2 = vld [vmem:[#allocation8 + $0x144] ss:$8 sps:$4 sm:$0xff]   ;;  %v1123_v3 = vld [vmem:[#allocation11 + $0xa0] ss:$8 sps:$4 sm:$0xff]   ;;  %v1371_v24 = vshrl.u32 %v94_v23, 7 }
  0x62   :  { %460 = vmatprep.subr.bf16.mxu0 %v1029_v12  ;;  %833 = vmatprep.subr.bf16.mxu1 %v1103_v36  ;;  %v1124_v4 = vld [vmem:[#allocation11 + $0xb4] ss:$8 sps:$4 sm:$0xff]   ;;  %v1074_v5 = vld [vmem:[#allocation8 + $0x140] ss:$8 sps:$4 sm:$0xff]   ;;  %v1126_v7 = vld [vmem:[#allocation11 + $0xb0] ss:$8 sps:$4 sm:$0xff]  }
  0x63   :  { %v1079_v6 = vld [vmem:[#allocation8 + $0x154] ss:$8 sps:$4 sm:$0xff]   ;;  %v1127_v8 = vld [vmem:[#allocation11 + $0xc4] ss:$8 sps:$4 sm:$0xff]   ;;  %v1077_v9 = vld [vmem:[#allocation8 + $0x150] ss:$8 sps:$4 sm:$0xff]  }
  0x64   :  { %v1085_v10 = vld [vmem:[#allocation8 + $0x164] ss:$8 sps:$4 sm:$0xff]   ;;  %v1129_v11 = vld [vmem:[#allocation11 + $0xc0] ss:$8 sps:$4 sm:$0xff]   ;;  %v1088_v13 = vld [vmem:[#allocation8 + $0x174] ss:$8 sps:$4 sm:$0xff]  }
  0x65   :  { %461 = vmatpush1.bf16.msra.mxu0 %v1031_v14  ;;  %834 = vmatpush1.bf16.msra.mxu1 %v1105_v39  ;;  %v1083_v12 = vld [vmem:[#allocation8 + $0x160] ss:$8 sps:$4 sm:$0xff]   ;;  %v1086_v14 = vld [vmem:[#allocation8 + $0x170] ss:$8 sps:$4 sm:$0xff]   ;;  %v100_v27 = vsub.s32 1, %v1371_v24 }
  0x66   :  { %462 = vmatprep.subr.bf16.mxu0 %v1032_v15  ;;  %835 = vmatprep.subr.bf16.mxu1 %v1106_v40  ;;  %v1089_v15 = vld [vmem:[#allocation5 + $0x8] ss:$12 sps:$4 sm:$0xff]  }
  0x67   :  { %v1138_v22 = vld [vmem:[#allocation11 + $0xf0] ss:$8 sps:$4 sm:$0xff]   ;;  %v592_v32 = vld [vmem:[#allocation10] sm:$0xff] }
  0x69   :  { %463 = vmatpush1.bf16.msra.mxu0 %v1034_v16  ;;  %836 = vmatpush1.bf16.msra.mxu1 %v1108_v43  ;;  %v1090_v16 = vld [vmem:[#allocation5 + $0x20] ss:$12 sps:$4 sm:$0xff]  }
  0x6a   :  { %464 = vmatprep.subr.bf16.mxu0 %v1035_v17  ;;  %837 = vmatprep.subr.bf16.mxu1 %v1109_v44  ;;  %v1130_v17 = vld [vmem:[#allocation11 + $0xd4] ss:$8 sps:$4 sm:$0xff]  }
  0x6d   :  { %465 = vmatpush1.bf16.msra.mxu0 %v1037_v18  ;;  %838 = vmatpush1.bf16.msra.mxu1 %v1111_v47  ;;  %v1132_v18 = vld [vmem:[#allocation11 + $0xd0] ss:$8 sps:$4 sm:$0xff]  }
  0x6e   :  { %466 = vmatprep.subr.bf16.mxu0 %v1038_v19  ;;  %839 = vmatprep.subr.bf16.mxu1 %v1112_v48  ;;  %v1133_v19 = vld [vmem:[#allocation11 + $0xe4] ss:$8 sps:$4 sm:$0xff]  }
  0x71   :  { %467 = vmatpush1.bf16.msra.mxu0 %v1040_v20  ;;  %840 = vmatpush1.bf16.msra.mxu1 %v1114_v53  ;;  %v1135_v20 = vld [vmem:[#allocation11 + $0xe0] ss:$8 sps:$4 sm:$0xff]  }
  0x72   :  { %468 = vmatprep.subr.bf16.mxu0 %v1041_v21  ;;  %841 = vmatprep.subr.bf16.mxu1 %v1115_v54  ;;  %v1136_v21 = vld [vmem:[#allocation11 + $0xf4] ss:$8 sps:$4 sm:$0xff]  }
  0x75   :  { %469 = vmatpush1.bf16.msra.mxu0 %v1043_v25  ;;  %842 = vmatpush1.bf16.msra.mxu1 %v1117_v57  ;;  %v96_v25 = vsub.s32 0, %v1371_v24 }
  0x76   :  { %470 = vmatprep.subr.bf16.mxu0 %v1044_v26  ;;  %843 = vmatprep.subr.bf16.mxu1 %v1118_v58  ;;  %v92_v26 = vld [vmem:[%s1415_s5] sm:$0x3]  ;;  %s1268_s5 = smov [#allocation13]  }
  0x77   :  { %v97_v28 = vrot.slane %v92_v26, %v96_v25 }
  0x79   :  { %471 = vmatpush1.bf16.msra.mxu0 %v1046_v29  ;;  %844 = vmatpush1.bf16.msra.mxu1 %v1120_v62  ;;  %v101_v29 = vrot.slane %v92_v26, %v100_v27  ;;  %v599_v62 = vld [vmem:[#allocation10 + $0x38] sm:$0xff] }
  0x7a   :  { %472 = vmatprep.subr.bf16.mxu0 %v1047_v30  ;;  %845 = vmatprep.subr.bf16.mxu1 %v1121_v63 }
  0x7d   :  { %473 = vmatpush1.bf16.msra.mxu0 %v1049_v33  ;;  %846 = vmatpush1.bf16.msra.mxu1 %v1123_v3  ;;  %v600_v33 = vstv %s1411_s1 }
  0x7e   :  { %474 = vmatprep.subr.bf16.mxu0 %v1050_v34  ;;  %847 = vmatprep.subr.bf16.mxu1 %v1124_v4  ;;  %v594_v34 = vld [vmem:[#allocation10 + $0x10] sm:$0xff] }
  0x7f   :  { %v603_v44 = vmul.f32 %v600_v33, %v594_v34 }
  0x81   :  { %475 = vmatpush1.bf16.msra.mxu0 %v1052_v37  ;;  %848 = vmatpush1.bf16.msra.mxu1 %v1126_v7  ;;  %v593_v37 = vld [vmem:[#allocation10 + $0x8] sm:$0xff] }
  0x82   :  { %476 = vmatprep.subr.bf16.mxu0 %v1053_v38  ;;  %849 = vmatprep.subr.bf16.mxu1 %v1127_v8  ;;  %v595_v38 = vld [vmem:[#allocation10 + $0x18] sm:$0xff]  ;;  %v602_v48 = vmul.f32 %v600_v33, %v593_v37 }
  0x85   :  { %477 = vmatpush1.bf16.msra.mxu0 %v1055_v41  ;;  %850 = vmatpush1.bf16.msra.mxu1 %v1129_v11  ;;  %v608_v11 = vmul.f32 %v600_v33, %v599_v62 }
  0x86   :  { %478 = vmatprep.subr.bf16.mxu0 %v1056_v42  ;;  %851 = vmatprep.subr.bf16.mxu1 %v1130_v17  ;;  %v601_v42 = vmul.f32 %v600_v33, %v592_v32 }
  0x89   :  { %479 = vmatpush1.bf16.msra.mxu0 %v1058_v45  ;;  %852 = vmatpush1.bf16.msra.mxu1 %v1132_v18 }
  0x8a   :  { %501 = vmatprep.subr.bf16.mxu0 %v1064_v46  ;;  %853 = vmatprep.subr.bf16.mxu1 %v1133_v19 }
  0x8c   :  { %481 = vmatmul.mubr.bf16.vlgmr.msra.gmra.mrb[0].mxu0 %v1059_v49  ;;  %v604_v49 = vmul.f32 %v600_v33, %v595_v38 }
  0x8d   :  { %502 = vmatpush1.bf16.msra.mxu0 %v1062_v50  ;;  %490 = vmatprep.mubr.bf16.mxu0 %v1080_v51 }
  0x8e   :  { %503 = vmatprep.subr.bf16.mxu0 %v1067_v52  ;;  %854 = vmatpush1.bf16.msra.mxu1 %v1135_v20  ;;  %v653_v20 = vld [vmem:[%s1417_s7] sm:$0x3]  ;;  %s891_s7 = sshll.u32 %s1268_s5, 4  ;;  %s892_s7 = int_to_ptr.vmem [resolvable:$true] %s891_s7 }
  0x8f   :  { %855 = vmatprep.subr.bf16.mxu1 %v1136_v21  ;;  %v658_v21 = vrot.slane %v653_v20, %v96_v25  ;;  %s1227_s18 = scalar_lea.vmem %s892_s7, 1024  ;;  %p1232_p5 = scmp.lt.s32.totalorder %s892_s7, %s892_s7 }
  0x90   :  { %p1228_p4 = scmp.ne.s32.totalorder %s892_s7, %s1227_s18  ;;  %p1233_p6 = scmp.lt.s32.totalorder %s1227_s18, %s1227_s18 }
  0x91   :  { %504 = vmatpush1.bf16.msra.mxu0 %v1065_v55  ;;  %v596_v55 = vld [vmem:[#allocation10 + $0x20] sm:$0xff] }
  0x92   :  { %505 = vmatprep.subr.bf16.mxu0 %v1070_v56  ;;  %856 = vmatpush1.bf16.msra.mxu1 %v1138_v22  ;;  %v598_v56 = vld [vmem:[#allocation10 + $0x30] sm:$0xff]  ;;  %v605_v4 = vmul.f32 %v600_v33, %v596_v55  ;;  %v662_v22 = vrot.slane %v653_v20, %v100_v27  ;;  %p1234_p7 = por %p1233_p6, %p1232_p5 }
  0x94   :  { %491 = vmatmul.mubr.bf16.gmra.mrb[4].mxu0 %v1082_v59  ;;  %p1235_p8 = pnand %p1234_p7, %p1228_p4 }
  0x95   :  { %506 = vmatpush1.bf16.msra.mxu0 %v1068_v60  ;;  %533 = vmatprep.mubr.bf16.mxu0 %v1267_v1 }
  0x96   :  { %507 = vmatprep.subr.bf16.mxu0 %v1073_v61  ;;  %v597_v61 = vld [vmem:[#allocation10 + $0x28] sm:$0xff] }
  0x99   :  { %508 = vmatpush1.bf16.msra.mxu0 %v1071_v0 }
  0x9a   :  { %509 = vmatprep.subr.bf16.mxu0 %v1076_v2 }
  0x9d   :  { %510 = vmatpush1.bf16.msra.mxu0 %v1074_v5 }
  0x9e   :  { %511 = vmatprep.subr.bf16.mxu0 %v1079_v6  ;;  %v607_v6 = vmul.f32 %v600_v33, %v598_v56 }
  0xa1   :  { %512 = vmatpush1.bf16.msra.mxu0 %v1077_v9  ;;  %v606_v9 = vmul.f32 %v600_v33, %v597_v61 }
  0xa2   :  { %513 = vmatprep.subr.bf16.mxu0 %v1085_v10 }
  0xa5   :  { %514 = vmatpush1.bf16.msra.mxu0 %v1083_v12 }
  0xa6   :  { %515 = vmatprep.subr.bf16.mxu0 %v1088_v13 }
  0xa9   :  { %516 = vmatpush1.bf16.msra.mxu0 %v1086_v14 }
  0xac   :  { %534 = vmatmul.mubr.bf16.vlgmr.msra.gmra.mrb[0].mxu0 %v1089_v15 }
  0xad   :  { %543 = vmatprep.mubr.bf16.mxu0 %v1267_v1 }
  0xb4   :  { %544 = vmatmul.mubr.bf16.gmra.mrb[4].mxu0 %v1090_v16 }
 0x17f   :  { %v535_v30 = vpop.f32.mrb[0].mxu0 }
 0x180   :  { %v554_v35 = vadd.f32 %v535_v30, %v97_v28  ;;  %v537_v36 = vpop.f32.mrb[1].mxu0 }
 0x181   :  { %v555_v39 = vadd.f32 %v537_v36, %v101_v29  ;;  %v539_v40 = vpop.f32.mrb[2].mxu0 }
 0x182   :  { %v583_v41 = vmul.f32 %v582_v31, %v554_v35  ;;  %v556_v43 = vadd.f32 %v539_v40, %v97_v28  ;;  %v541_v45 = vpop.f32.mrb[3].mxu0 }
 0x183   :  { %v584_v46 = vmul.f32 %v582_v31, %v555_v39  ;;  %v557_v47 = vadd.f32 %v541_v45, %v101_v29 }
 0x184   :  { %v585_v50 = vmul.f32 %v582_v31, %v556_v43  ;;  %v609_v52 = vadd.f32 %v601_v42, %v583_v41 }
 0x185   :  { %v586_v51 = vmul.f32 %v582_v31, %v557_v47  ;;  %v610_v57 = vadd.f32 %v602_v48, %v584_v46 }
 0x186   :  { %v611_v53 = vadd.f32 %v603_v44, %v585_v50 }
 0x187   :  { %v545_v54 = vpop.f32.mrb[4].mxu0  ;;  %v612_v58 = vadd.f32 %v604_v49, %v586_v51 }
 0x188   :  { %v558_v59 = vadd.f32 %v545_v54, %v97_v28  ;;  %v547_v60 = vpop.f32.mrb[5].mxu0  ;;  %v617_v63 = vpack.c.bf16 %v611_v53, %v609_v52 }
 0x189   :  { %v559_v0 = vadd.f32 %v547_v60, %v101_v29  ;;  %v549_v1 = vpop.f32.mrb[6].mxu0  ;;  %v618_v2 = vpack.c.bf16 %v612_v58, %v610_v57 }
 0x18a   :  { %v587_v3 = vmul.f32 %v582_v31, %v558_v59  ;;  %v560_v5 = vadd.f32 %v549_v1, %v97_v28  ;;  %v551_v7 = vpop.f32.mrb[7].mxu0 }
 0x18b   :  { %v588_v8 = vmul.f32 %v582_v31, %v559_v0  ;;  %v561_v10 = vadd.f32 %v551_v7, %v101_v29  ;;  %857 = vmatprep.mubr.bf16.mxu1 %v618_v2 }
 0x18c   :  { %v589_v12 = vmul.f32 %v582_v31, %v560_v5  ;;  %858 = vmatmul.mubr.bf16.vlgmr.msra.gmra.mrb[0].mxu1 %v617_v63  ;;  %v613_v14 = vadd.f32 %v605_v4, %v587_v3 }
 0x18d   :  { %v590_v13 = vmul.f32 %v582_v31, %v561_v10  ;;  %v614_v16 = vadd.f32 %v606_v9, %v588_v8 }
 0x18e   :  { %v615_v15 = vadd.f32 %v607_v6, %v589_v12 }
 0x18f   :  { %v616_v17 = vadd.f32 %v608_v11, %v590_v13 }
 0x190   :  { %v619_v18 = vpack.c.bf16 %v615_v15, %v613_v14 }
 0x191   :  { %v620_v19 = vpack.c.bf16 %v616_v17, %v614_v16 }
 0x193   :  { %867 = vmatprep.mubr.bf16.mxu1 %v620_v19 }
 0x194   :  { %868 = vmatmul.mubr.bf16.gmra.mrb[4].mxu1 %v619_v18 }
 0x25f   :  { %v859_v23 = vpop.f32.mrb[0].mxu1 }
 0x260   :  { %v860_v26 = vadd.f32 %v859_v23, %v658_v21  ;;  %v861_v28 = vpop.f32.mrb[1].mxu1 }
 0x261   :  { %v862_v29 = vadd.f32 %v861_v28, %v662_v22  ;;  %v863_v30 = vpop.f32.mrb[2].mxu1 }
 0x262   :  { %878 = vst [vmem:[#allocation13] sm:$0xff] %v860_v26  ;;  %v864_v31 = vadd.f32 %v863_v30, %v658_v21  ;;  %v865_v32 = vpop.f32.mrb[3].mxu1 }
 0x263   :  { %879 = vst [vmem:[#allocation13 + $0x8] sm:$0xff] %v862_v29  ;;  %v866_v33 = vadd.f32 %v865_v32, %v662_v22 }
 0x264   :  { %880 = vst [vmem:[#allocation13 + $0x10] sm:$0xff] %v864_v31 }
 0x265   :  { %881 = vst [vmem:[#allocation13 + $0x18] sm:$0xff] %v866_v33 }
 0x267   :  { %v869_v34 = vpop.f32.mrb[4].mxu1 }
 0x268   :  { %v870_v35 = vadd.f32 %v869_v34, %v658_v21  ;;  %v871_v36 = vpop.f32.mrb[5].mxu1 }
 0x269   :  { %v872_v25 = vadd.f32 %v871_v36, %v662_v22  ;;  %v873_v24 = vpop.f32.mrb[6].mxu1 }
 0x26a   :  { %882 = vst [vmem:[#allocation13 + $0x20] sm:$0xff] %v870_v35  ;;  %v874_v27 = vadd.f32 %v873_v24, %v658_v21  ;;  %v875_v37 = vpop.f32.mrb[7].mxu1 }
 0x26b   :  { %883 = vst [vmem:[#allocation13 + $0x28] sm:$0xff] %v872_v25  ;;  %v876_v38 = vadd.f32 %v875_v37, %v662_v22 }
 0x26c   :  { %884 = vst [vmem:[#allocation13 + $0x30] sm:$0xff] %v874_v27 }
 0x26d   :  { %885 = vst [vmem:[#allocation13 + $0x38] sm:$0xff] %v876_v38 }
 0x26e   :  { %1238 = shalt.err (!%p1235_p8)
}
 0x26f   :  { %s1239_s22 = scalar_lea.hbm %s1418_s8, 1024 }
 0x270   :  { %p1240_p9 = scmp.ne.s32.totalorder %s1418_s8, %s1239_s22  ;;  %p1243_p10 = scmp.lt.u32.totalorder %s1239_s22, %s1418_s8 }
 0x272   :  { %p1245_p11 = pnand %p1243_p10, %p1240_p9 }
 0x274   :  { %1248 = shalt.err (!%p1245_p11)
}
 0x275   :  { %897 = dma.vmem_to_hbm [thread:$0]  %s892_s7, 1024, %s1418_s8, [#allocation7], %s1264_s2, %s1264_s2, %s1265_s20  }
 0x276   :  { %1255 = dma.done.wait [#allocation7], 1024  }
 0x277   :  { %1256 = vsyncadd [#allocation7], 4294966272 }
 0x278   :  { %901 = vsyncpa [#allocation6], 1 }
 0x279   :  { %902 = vsyncpa [#allocation9], 1 }
 0x27a   :  { %903 = vsyncpa [#allocation12], 1 }
 0x27b   :  { %904 = vsyncpa [#allocation7], 1 }

// kernel: tpu_custom_call.1
= control target key start
LH: loop header
LB: loop body
LE: loop exit
PB: predicated region body
PF: predicated region fallthrough
CT: control target
= control target key end

     0   :  { %15 = vsyncpa [#allocation6], 0  ;;  %s1410_s0 = inlined_call_operand.<no memory space> [shape: f32[1,1], index: 0, kind: input, shape index: {}]   ;;  %s1411_s1 = inlined_call_operand.<no memory space> [shape: f32[1,1], index: 1, kind: input, shape index: {}]   ;;  %s1412_s2 = inlined_call_operand.hbm [shape: bf16[32,384], index: 2, kind: input, shape index: {}]   ;;  %s1413_s3 = inlined_call_operand.hbm [shape: bf16[384,256], index: 3, kind: input, shape index: {}]   ;;  %s1414_s4 = inlined_call_operand.hbm [shape: f32[32,256], index: 4, kind: input, shape index: {}]   ;;  %s1415_s5 = inlined_call_operand.vmem [shape: f32[1,256], index: 5, kind: input, shape index: {}]   ;;  %s1416_s6 = inlined_call_operand.hbm [shape: bf16[256,256], index: 6, kind: input, shape index: {}]   ;;  %s1417_s7 = inlined_call_operand.vmem [shape: f32[1,256], index: 7, kind: input, shape index: {}]   ;;  %s1418_s8 = inlined_call_operand.hbm [shape: f32[32,256], index: 8, kind: output, shape index: {}]  }
   0x1   :  { %16 = vsyncpa [#allocation9], 0 }
   0x2   :  { %17 = vsyncpa [#allocation12], 0 }
   0x3   :  { %18 = vsyncpa [#allocation7], 0  ;;  %s1257_s27 = smov [#allocation8]   ;;  %s1139_s9 = scalar_lea.hbm %s1413_s3, 6144 }
   0x4   :  { %s40_s28 = sshll.u32 %s1257_s27, 4  ;;  %p1140_p0 = scmp.ne.s32.totalorder %s1413_s3, %s1139_s9  ;;  %s41_s28 = int_to_ptr.vmem [resolvable:$true] %s40_s28 }
   0x5   :  { %p1143_p1 = scmp.lt.u32.totalorder %s1139_s9, %s1413_s3 }
   0x7   :  { %p1145_p2 = pnand %p1143_p1, %p1140_p0 }
   0x9   :  { %1148 = shalt.err (!%p1145_p2)
}
   0xa   :  { %s1149_s14 = scalar_lea.vmem %s41_s28, 6144  ;;  %p1154_p4 = scmp.lt.s32.totalorder %s41_s28, %s41_s28 }
   0xb   :  { %p1150_p3 = scmp.ne.s32.totalorder %s41_s28, %s1149_s14  ;;  %p1155_p5 = scmp.lt.s32.totalorder %s1149_s14, %s1149_s14 }
   0xd   :  { %p1156_p6 = por %p1155_p5, %p1154_p4 }
   0xf   :  { %p1157_p7 = pnand %p1156_p6, %p1150_p3 }
  0x11   :  { %1160 = shalt.err (!%p1157_p7)
}
  0x12   :  { %s1258_s15 = smov 128   ;;  %s1259_s16 = smov 8  }
  0x13   :  { %46 = dma.hbm_to_vmem [thread:$0]  %s1413_s3, 6144, %s41_s28, [#allocation9], %s1258_s15, %s1258_s15, %s1259_s16  }
  0x14   :  { %s1260_s19 = smov [#allocation5]   ;;  %s1161_s23 = scalar_lea.hbm %s1412_s2, 768 }
  0x15   :  { %s28_s20 = sshll.u32 %s1260_s19, 4  ;;  %p1162_p8 = scmp.ne.s32.totalorder %s1412_s2, %s1161_s23  ;;  %s29_s20 = int_to_ptr.vmem [resolvable:$true] %s28_s20 }
  0x16   :  { %p1165_p9 = scmp.lt.u32.totalorder %s1161_s23, %s1412_s2 }
  0x18   :  { %p1167_p10 = pnand %p1165_p9, %p1162_p8 }
  0x1a   :  { %1170 = shalt.err (!%p1167_p10)
}
  0x1b   :  { %s1171_s29 = scalar_lea.vmem %s29_s20, 768  ;;  %p1176_p12 = scmp.lt.s32.totalorder %s29_s20, %s29_s20 }
  0x1c   :  { %p1172_p11 = scmp.ne.s32.totalorder %s29_s20, %s1171_s29  ;;  %p1177_p13 = scmp.lt.s32.totalorder %s1171_s29, %s1171_s29 }
  0x1e   :  { %p1178_p0 = por %p1177_p13, %p1176_p12 }
  0x20   :  { %p1179_p1 = pnand %p1178_p0, %p1172_p11 }
  0x22   :  { %1182 = shalt.err (!%p1179_p1)
}
  0x23   :  { %s1261_s3 = smov 192   ;;  %s1262_s28 = smov 12  }
  0x24   :  { %34 = dma.hbm_to_vmem [thread:$0]  %s1412_s2, 768, %s29_s20, [#allocation6], %s1261_s3, %s1261_s3, %s1262_s28  }
  0x25   :  { %s1263_s10 = smov [#allocation10]   ;;  %s1183_s14 = scalar_lea.hbm %s1414_s4, 1024 }
  0x26   :  { %s52_s11 = sshll.u32 %s1263_s10, 4  ;;  %p1184_p2 = scmp.ne.s32.totalorder %s1414_s4, %s1183_s14  ;;  %s53_s11 = int_to_ptr.vmem [resolvable:$true] %s52_s11 }
  0x27   :  { %p1187_p3 = scmp.lt.u32.totalorder %s1183_s14, %s1414_s4 }
  0x29   :  { %p1189_p4 = pnand %p1187_p3, %p1184_p2 }
  0x2b   :  { %1192 = shalt.err (!%p1189_p4)
}
  0x2c   :  { %s1193_s22 = scalar_lea.vmem %s53_s11, 1024  ;;  %p1198_p6 = scmp.lt.s32.totalorder %s53_s11, %s53_s11 }
  0x2d   :  { %p1194_p5 = scmp.ne.s32.totalorder %s53_s11, %s1193_s22  ;;  %p1199_p7 = scmp.lt.s32.totalorder %s1193_s22, %s1193_s22 }
  0x2f   :  { %p1200_p8 = por %p1199_p7, %p1198_p6 }
  0x31   :  { %p1201_p9 = pnand %p1200_p8, %p1194_p5 }
  0x33   :  { %1204 = shalt.err (!%p1201_p9)
}
  0x34   :  { %s1264_s2 = smov 256   ;;  %s1265_s20 = smov 16  }
  0x35   :  { %58 = dma.hbm_to_vmem [thread:$0]  %s1414_s4, 1024, %s53_s11, [#allocation9], %s1264_s2, %s1264_s2, %s1265_s20  }
  0x36   :  { %s1266_s25 = smov [#allocation11]   ;;  %s1205_s3 = scalar_lea.hbm %s1416_s6, 4096 }
  0x37   :  { %s66_s26 = sshll.u32 %s1266_s25, 4  ;;  %p1206_p10 = scmp.ne.s32.totalorder %s1416_s6, %s1205_s3  ;;  %s67_s26 = int_to_ptr.vmem [resolvable:$true] %s66_s26 }
  0x38   :  { %p1209_p11 = scmp.lt.u32.totalorder %s1205_s3, %s1416_s6 }
  0x3a   :  { %p1211_p12 = pnand %p1209_p11, %p1206_p10 }
  0x3c   :  { %1214 = shalt.err (!%p1211_p12)
}
  0x3d   :  { %s1215_s12 = scalar_lea.vmem %s67_s26, 4096  ;;  %p1220_p0 = scmp.lt.s32.totalorder %s67_s26, %s67_s26 }
  0x3e   :  { %p1216_p13 = scmp.ne.s32.totalorder %s67_s26, %s1215_s12  ;;  %p1221_p1 = scmp.lt.s32.totalorder %s1215_s12, %s1215_s12 }
  0x40   :  { %p1222_p2 = por %p1221_p1, %p1220_p0 }
  0x42   :  { %p1223_p3 = pnand %p1222_p2, %p1216_p13 }
  0x44   :  { %1226 = shalt.err (!%p1223_p3)
}
  0x45   :  { %72 = dma.hbm_to_vmem [thread:$0]  %s1416_s6, 4096, %s67_s26, [#allocation12], %s1258_s15, %s1258_s15, %s1259_s16  }
  0x46   :  { %1249 = dma.done.wait [#allocation6], 768  }
  0x47   :  { %1250 = vsyncadd [#allocation6], 4294966528 }
  0x48   :  { %1251 = dma.done.wait [#allocation9], 7168  }
  0x49   :  { %1252 = vsyncadd [#allocation9], 4294960128 }
  0x4a   :  { %1253 = dma.done.wait [#allocation12], 4096  }
  0x4b   :  { %1254 = vsyncadd [#allocation12], 4294963200  ;;  %v1011_v0 = vld [vmem:[#allocation8 + $0x4] ss:$8 sps:$4 sm:$0xff]   ;;  %v1013_v1 = vld [vmem:[#allocation8] ss:$8 sps:$4 sm:$0xff]  }
  0x4c   :  { %448 = vmatprep.subr.bf16.mxu0 %v1011_v0  ;;  %v1014_v2 = vld [vmem:[#allocation8 + $0x14] ss:$8 sps:$4 sm:$0xff]   ;;  %v1016_v3 = vld [vmem:[#allocation8 + $0x10] ss:$8 sps:$4 sm:$0xff]   ;;  %v1017_v4 = vld [vmem:[#allocation8 + $0x24] ss:$8 sps:$4 sm:$0xff]  }
  0x4d   :  { %449 = vmatpush1.bf16.msra.mxu0 %v1013_v1  ;;  %v1019_v5 = vld [vmem:[#allocation8 + $0x20] ss:$8 sps:$4 sm:$0xff]   ;;  %v1020_v6 = vld [vmem:[#allocation8 + $0x34] ss:$8 sps:$4 sm:$0xff]   ;;  %v1022_v7 = vld [vmem:[#allocation8 + $0x30] ss:$8 sps:$4 sm:$0xff]  }
  0x4e   :  { %450 = vmatprep.subr.bf16.mxu0 %v1014_v2  ;;  %v1023_v8 = vld [vmem:[#allocation8 + $0x44] ss:$8 sps:$4 sm:$0xff]   ;;  %v1025_v9 = vld [vmem:[#allocation8 + $0x40] ss:$8 sps:$4 sm:$0xff]   ;;  %v1026_v10 = vld [vmem:[#allocation8 + $0x54] ss:$8 sps:$4 sm:$0xff]  }
  0x4f   :  { %v1028_v11 = vld [vmem:[#allocation8 + $0x50] ss:$8 sps:$4 sm:$0xff]   ;;  %v1029_v12 = vld [vmem:[#allocation8 + $0x64] ss:$8 sps:$4 sm:$0xff]   ;;  %v1061_v13 = vld [vmem:[#allocation5 + $0x4] ss:$12 sps:$4 sm:$0xff]  }
  0x50   :  { %v1031_v14 = vld [vmem:[#allocation8 + $0x60] ss:$8 sps:$4 sm:$0xff]   ;;  %v1032_v15 = vld [vmem:[#allocation8 + $0x74] ss:$8 sps:$4 sm:$0xff]   ;;  %480 = vmatprep.mubr.bf16.mxu0 %v1061_v13  ;;  %v1034_v16 = vld [vmem:[#allocation8 + $0x70] ss:$8 sps:$4 sm:$0xff]  }
  0x51   :  { %451 = vmatpush1.bf16.msra.mxu0 %v1016_v3  ;;  %v1035_v17 = vld [vmem:[#allocation8 + $0x84] ss:$8 sps:$4 sm:$0xff]   ;;  %v1037_v18 = vld [vmem:[#allocation8 + $0x80] ss:$8 sps:$4 sm:$0xff]   ;;  %v1038_v19 = vld [vmem:[#allocation8 + $0x94] ss:$8 sps:$4 sm:$0xff]  }
  0x52   :  { %452 = vmatprep.subr.bf16.mxu0 %v1017_v4  ;;  %v1040_v20 = vld [vmem:[#allocation8 + $0x90] ss:$8 sps:$4 sm:$0xff]   ;;  %v1041_v21 = vld [vmem:[#allocation8 + $0xa4] ss:$8 sps:$4 sm:$0xff]   ;;  %v1093_v23 = vld [vmem:[#allocation11] ss:$8 sps:$4 sm:$0xff]  }
  0x53   :  { %v1091_v22 = vld [vmem:[#allocation11 + $0x4] ss:$8 sps:$4 sm:$0xff]   ;;  %v1094_v24 = vld [vmem:[#allocation11 + $0x14] ss:$8 sps:$4 sm:$0xff]   ;;  %v1043_v25 = vld [vmem:[#allocation8 + $0xa0] ss:$8 sps:$4 sm:$0xff]  }
  0x54   :  { %825 = vmatprep.subr.bf16.mxu1 %v1091_v22  ;;  %v1044_v26 = vld [vmem:[#allocation8 + $0xb4] ss:$8 sps:$4 sm:$0xff]   ;;  %v1096_v27 = vld [vmem:[#allocation11 + $0x10] ss:$8 sps:$4 sm:$0xff]   ;;  %v1097_v28 = vld [vmem:[#allocation11 + $0x24] ss:$8 sps:$4 sm:$0xff]  }
  0x55   :  { %453 = vmatpush1.bf16.msra.mxu0 %v1019_v5  ;;  %826 = vmatpush1.bf16.msra.mxu1 %v1093_v23  ;;  %v1046_v29 = vld [vmem:[#allocation8 + $0xb0] ss:$8 sps:$4 sm:$0xff]   ;;  %v1047_v30 = vld [vmem:[#allocation8 + $0xc4] ss:$8 sps:$4 sm:$0xff]   ;;  %v1099_v31 = vld [vmem:[#allocation11 + $0x20] ss:$8 sps:$4 sm:$0xff]   ;;  %v94_v23 = vlaneseq }
  0x56   :  { %454 = vmatprep.subr.bf16.mxu0 %v1020_v6  ;;  %827 = vmatprep.subr.bf16.mxu1 %v1094_v24  ;;  %v1100_v32 = vld [vmem:[#allocation11 + $0x34] ss:$8 sps:$4 sm:$0xff]   ;;  %v1049_v33 = vld [vmem:[#allocation8 + $0xc0] ss:$8 sps:$4 sm:$0xff]   ;;  %v1102_v35 = vld [vmem:[#allocation11 + $0x30] ss:$8 sps:$4 sm:$0xff]  }
  0x57   :  { %v1050_v34 = vld [vmem:[#allocation8 + $0xd4] ss:$8 sps:$4 sm:$0xff]   ;;  %v1103_v36 = vld [vmem:[#allocation11 + $0x44] ss:$8 sps:$4 sm:$0xff]   ;;  %v1052_v37 = vld [vmem:[#allocation8 + $0xd0] ss:$8 sps:$4 sm:$0xff]  }
  0x58   :  { %v1053_v38 = vld [vmem:[#allocation8 + $0xe4] ss:$8 sps:$4 sm:$0xff]   ;;  %v1105_v39 = vld [vmem:[#allocation11 + $0x40] ss:$8 sps:$4 sm:$0xff]   ;;  %v1106_v40 = vld [vmem:[#allocation11 + $0x54] ss:$8 sps:$4 sm:$0xff]  }
  0x59   :  { %455 = vmatpush1.bf16.msra.mxu0 %v1022_v7  ;;  %828 = vmatpush1.bf16.msra.mxu1 %v1096_v27  ;;  %v1055_v41 = vld [vmem:[#allocation8 + $0xe0] ss:$8 sps:$4 sm:$0xff]   ;;  %v1056_v42 = vld [vmem:[#allocation8 + $0xf4] ss:$8 sps:$4 sm:$0xff]   ;;  %v1108_v43 = vld [vmem:[#allocation11 + $0x50] ss:$8 sps:$4 sm:$0xff]  }
  0x5a   :  { %456 = vmatprep.subr.bf16.mxu0 %v1023_v8  ;;  %829 = vmatprep.subr.bf16.mxu1 %v1097_v28  ;;  %v1109_v44 = vld [vmem:[#allocation11 + $0x64] ss:$8 sps:$4 sm:$0xff]   ;;  %v1058_v45 = vld [vmem:[#allocation8 + $0xf0] ss:$8 sps:$4 sm:$0xff]   ;;  %v1111_v47 = vld [vmem:[#allocation11 + $0x60] ss:$8 sps:$4 sm:$0xff]  }
  0x5b   :  { %v1064_v46 = vld [vmem:[#allocation8 + $0x104] ss:$8 sps:$4 sm:$0xff]   ;;  %v1112_v48 = vld [vmem:[#allocation11 + $0x74] ss:$8 sps:$4 sm:$0xff]   ;;  %v1062_v50 = vld [vmem:[#allocation8 + $0x100] ss:$8 sps:$4 sm:$0xff]  }
  0x5c   :  { %v1059_v49 = vld [vmem:[#allocation5] ss:$12 sps:$4 sm:$0xff]   ;;  %v1080_v51 = vld [vmem:[#allocation5 + $0x1c] ss:$12 sps:$4 sm:$0xff]   ;;  %v1117_v57 = vld [vmem:[#allocation11 + $0x80] ss:$8 sps:$4 sm:$0xff]  }
  0x5d   :  { %457 = vmatpush1.bf16.msra.mxu0 %v1025_v9  ;;  %830 = vmatpush1.bf16.msra.mxu1 %v1099_v31  ;;  %v1067_v52 = vld [vmem:[#allocation8 + $0x114] ss:$8 sps:$4 sm:$0xff]   ;;  %v1114_v53 = vld [vmem:[#allocation11 + $0x70] ss:$8 sps:$4 sm:$0xff]   ;;  %v1115_v54 = vld [vmem:[#allocation11 + $0x84] ss:$8 sps:$4 sm:$0xff]   ;;  %v582_v31 = vstv %s1410_s0 }
  0x5e   :  { %458 = vmatprep.subr.bf16.mxu0 %v1026_v10  ;;  %831 = vmatprep.subr.bf16.mxu1 %v1100_v32  ;;  %v1065_v55 = vld [vmem:[#allocation8 + $0x110] ss:$8 sps:$4 sm:$0xff]   ;;  %v1070_v56 = vld [vmem:[#allocation8 + $0x124] ss:$8 sps:$4 sm:$0xff]   ;;  %v1118_v58 = vld [vmem:[#allocation11 + $0x94] ss:$8 sps:$4 sm:$0xff]  }
  0x5f   :  { %v1082_v59 = vld [vmem:[#allocation5 + $0x18] ss:$12 sps:$4 sm:$0xff]   ;;  %v1120_v62 = vld [vmem:[#allocation11 + $0x90] ss:$8 sps:$4 sm:$0xff]   ;;  %v1121_v63 = vld [vmem:[#allocation11 + $0xa4] ss:$8 sps:$4 sm:$0xff]  }
  0x60   :  { %v1068_v60 = vld [vmem:[#allocation8 + $0x120] ss:$8 sps:$4 sm:$0xff]   ;;  %v1073_v61 = vld [vmem:[#allocation8 + $0x134] ss:$8 sps:$4 sm:$0xff]   ;;  %v1071_v0 = vld [vmem:[#allocation8 + $0x130] ss:$8 sps:$4 sm:$0xff]  }
  0x61   :  { %459 = vmatpush1.bf16.msra.mxu0 %v1028_v11  ;;  %832 = vmatpush1.bf16.msra.mxu1 %v1102_v35  ;;  %v1267_v1 = vmov 0   ;;  %v1076_v2 = vld [vmem:[#allocation8 + $0x144] ss:$8 sps:$4 sm:$0xff]   ;;  %v1123_v3 = vld [vmem:[#allocation11 + $0xa0] ss:$8 sps:$4 sm:$0xff]   ;;  %v1371_v24 = vshrl.u32 %v94_v23, 7 }
  0x62   :  { %460 = vmatprep.subr.bf16.mxu0 %v1029_v12  ;;  %833 = vmatprep.subr.bf16.mxu1 %v1103_v36  ;;  %v1124_v4 = vld [vmem:[#allocation11 + $0xb4] ss:$8 sps:$4 sm:$0xff]   ;;  %v1074_v5 = vld [vmem:[#allocation8 + $0x140] ss:$8 sps:$4 sm:$0xff]   ;;  %v1126_v7 = vld [vmem:[#allocation11 + $0xb0] ss:$8 sps:$4 sm:$0xff]  }
  0x63   :  { %v1079_v6 = vld [vmem:[#allocation8 + $0x154] ss:$8 sps:$4 sm:$0xff]   ;;  %v1127_v8 = vld [vmem:[#allocation11 + $0xc4] ss:$8 sps:$4 sm:$0xff]   ;;  %v1077_v9 = vld [vmem:[#allocation8 + $0x150] ss:$8 sps:$4 sm:$0xff]  }
  0x64   :  { %v1085_v10 = vld [vmem:[#allocation8 + $0x164] ss:$8 sps:$4 sm:$0xff]   ;;  %v1129_v11 = vld [vmem:[#allocation11 + $0xc0] ss:$8 sps:$4 sm:$0xff]   ;;  %v1088_v13 = vld [vmem:[#allocation8 + $0x174] ss:$8 sps:$4 sm:$0xff]  }
  0x65   :  { %461 = vmatpush1.bf16.msra.mxu0 %v1031_v14  ;;  %834 = vmatpush1.bf16.msra.mxu1 %v1105_v39  ;;  %v1083_v12 = vld [vmem:[#allocation8 + $0x160] ss:$8 sps:$4 sm:$0xff]   ;;  %v1086_v14 = vld [vmem:[#allocation8 + $0x170] ss:$8 sps:$4 sm:$0xff]   ;;  %v100_v27 = vsub.s32 1, %v1371_v24 }
  0x66   :  { %462 = vmatprep.subr.bf16.mxu0 %v1032_v15  ;;  %835 = vmatprep.subr.bf16.mxu1 %v1106_v40  ;;  %v1089_v15 = vld [vmem:[#allocation5 + $0x8] ss:$12 sps:$4 sm:$0xff]  }
  0x67   :  { %v1138_v22 = vld [vmem:[#allocation11 + $0xf0] ss:$8 sps:$4 sm:$0xff]   ;;  %v592_v32 = vld [vmem:[#allocation10] sm:$0xff] }
  0x69   :  { %463 = vmatpush1.bf16.msra.mxu0 %v1034_v16  ;;  %836 = vmatpush1.bf16.msra.mxu1 %v1108_v43  ;;  %v1090_v16 = vld [vmem:[#allocation5 + $0x20] ss:$12 sps:$4 sm:$0xff]  }
  0x6a   :  { %464 = vmatprep.subr.bf16.mxu0 %v1035_v17  ;;  %837 = vmatprep.subr.bf16.mxu1 %v1109_v44  ;;  %v1130_v17 = vld [vmem:[#allocation11 + $0xd4] ss:$8 sps:$4 sm:$0xff]  }
  0x6d   :  { %465 = vmatpush1.bf16.msra.mxu0 %v1037_v18  ;;  %838 = vmatpush1.bf16.msra.mxu1 %v1111_v47  ;;  %v1132_v18 = vld [vmem:[#allocation11 + $0xd0] ss:$8 sps:$4 sm:$0xff]  }
  0x6e   :  { %466 = vmatprep.subr.bf16.mxu0 %v1038_v19  ;;  %839 = vmatprep.subr.bf16.mxu1 %v1112_v48  ;;  %v1133_v19 = vld [vmem:[#allocation11 + $0xe4] ss:$8 sps:$4 sm:$0xff]  }
  0x71   :  { %467 = vmatpush1.bf16.msra.mxu0 %v1040_v20  ;;  %840 = vmatpush1.bf16.msra.mxu1 %v1114_v53  ;;  %v1135_v20 = vld [vmem:[#allocation11 + $0xe0] ss:$8 sps:$4 sm:$0xff]  }
  0x72   :  { %468 = vmatprep.subr.bf16.mxu0 %v1041_v21  ;;  %841 = vmatprep.subr.bf16.mxu1 %v1115_v54  ;;  %v1136_v21 = vld [vmem:[#allocation11 + $0xf4] ss:$8 sps:$4 sm:$0xff]  }
  0x75   :  { %469 = vmatpush1.bf16.msra.mxu0 %v1043_v25  ;;  %842 = vmatpush1.bf16.msra.mxu1 %v1117_v57  ;;  %v96_v25 = vsub.s32 0, %v1371_v24 }
  0x76   :  { %470 = vmatprep.subr.bf16.mxu0 %v1044_v26  ;;  %843 = vmatprep.subr.bf16.mxu1 %v1118_v58  ;;  %v92_v26 = vld [vmem:[%s1415_s5] sm:$0x3]  ;;  %s1268_s5 = smov [#allocation13]  }
  0x77   :  { %v97_v28 = vrot.slane %v92_v26, %v96_v25 }
  0x79   :  { %471 = vmatpush1.bf16.msra.mxu0 %v1046_v29  ;;  %844 = vmatpush1.bf16.msra.mxu1 %v1120_v62  ;;  %v101_v29 = vrot.slane %v92_v26, %v100_v27  ;;  %v599_v62 = vld [vmem:[#allocation10 + $0x38] sm:$0xff] }
  0x7a   :  { %472 = vmatprep.subr.bf16.mxu0 %v1047_v30  ;;  %845 = vmatprep.subr.bf16.mxu1 %v1121_v63 }
  0x7d   :  { %473 = vmatpush1.bf16.msra.mxu0 %v1049_v33  ;;  %846 = vmatpush1.bf16.msra.mxu1 %v1123_v3  ;;  %v600_v33 = vstv %s1411_s1 }
  0x7e   :  { %474 = vmatprep.subr.bf16.mxu0 %v1050_v34  ;;  %847 = vmatprep.subr.bf16.mxu1 %v1124_v4  ;;  %v594_v34 = vld [vmem:[#allocation10 + $0x10] sm:$0xff] }
  0x7f   :  { %v603_v44 = vmul.f32 %v600_v33, %v594_v34 }
  0x81   :  { %475 = vmatpush1.bf16.msra.mxu0 %v1052_v37  ;;  %848 = vmatpush1.bf16.msra.mxu1 %v1126_v7  ;;  %v593_v37 = vld [vmem:[#allocation10 + $0x8] sm:$0xff] }
  0x82   :  { %476 = vmatprep.subr.bf16.mxu0 %v1053_v38  ;;  %849 = vmatprep.subr.bf16.mxu1 %v1127_v8  ;;  %v595_v38 = vld [vmem:[#allocation10 + $0x18] sm:$0xff]  ;;  %v602_v48 = vmul.f32 %v600_v33, %v593_v37 }
  0x85   :  { %477 = vmatpush1.bf16.msra.mxu0 %v1055_v41  ;;  %850 = vmatpush1.bf16.msra.mxu1 %v1129_v11  ;;  %v608_v11 = vmul.f32 %v600_v33, %v599_v62 }
  0x86   :  { %478 = vmatprep.subr.bf16.mxu0 %v1056_v42  ;;  %851 = vmatprep.subr.bf16.mxu1 %v1130_v17  ;;  %v601_v42 = vmul.f32 %v600_v33, %v592_v32 }
  0x89   :  { %479 = vmatpush1.bf16.msra.mxu0 %v1058_v45  ;;  %852 = vmatpush1.bf16.msra.mxu1 %v1132_v18 }
  0x8a   :  { %501 = vmatprep.subr.bf16.mxu0 %v1064_v46  ;;  %853 = vmatprep.subr.bf16.mxu1 %v1133_v19 }
  0x8c   :  { %481 = vmatmul.mubr.bf16.vlgmr.msra.gmra.mrb[0].mxu0 %v1059_v49  ;;  %v604_v49 = vmul.f32 %v600_v33, %v595_v38 }
  0x8d   :  { %502 = vmatpush1.bf16.msra.mxu0 %v1062_v50  ;;  %490 = vmatprep.mubr.bf16.mxu0 %v1080_v51 }
  0x8e   :  { %503 = vmatprep.subr.bf16.mxu0 %v1067_v52  ;;  %854 = vmatpush1.bf16.msra.mxu1 %v1135_v20  ;;  %v653_v20 = vld [vmem:[%s1417_s7] sm:$0x3]  ;;  %s891_s7 = sshll.u32 %s1268_s5, 4  ;;  %s892_s7 = int_to_ptr.vmem [resolvable:$true] %s891_s7 }
  0x8f   :  { %855 = vmatprep.subr.bf16.mxu1 %v1136_v21  ;;  %v658_v21 = vrot.slane %v653_v20, %v96_v25  ;;  %s1227_s18 = scalar_lea.vmem %s892_s7, 1024  ;;  %p1232_p5 = scmp.lt.s32.totalorder %s892_s7, %s892_s7 }
  0x90   :  { %p1228_p4 = scmp.ne.s32.totalorder %s892_s7, %s1227_s18  ;;  %p1233_p6 = scmp.lt.s32.totalorder %s1227_s18, %s1227_s18 }
  0x91   :  { %504 = vmatpush1.bf16.msra.mxu0 %v1065_v55  ;;  %v596_v55 = vld [vmem:[#allocation10 + $0x20] sm:$0xff] }
  0x92   :  { %505 = vmatprep.subr.bf16.mxu0 %v1070_v56  ;;  %856 = vmatpush1.bf16.msra.mxu1 %v1138_v22  ;;  %v598_v56 = vld [vmem:[#allocation10 + $0x30] sm:$0xff]  ;;  %v605_v4 = vmul.f32 %v600_v33, %v596_v55  ;;  %v662_v22 = vrot.slane %v653_v20, %v100_v27  ;;  %p1234_p7 = por %p1233_p6, %p1232_p5 }
  0x94   :  { %491 = vmatmul.mubr.bf16.gmra.mrb[4].mxu0 %v1082_v59  ;;  %p1235_p8 = pnand %p1234_p7, %p1228_p4 }
  0x95   :  { %506 = vmatpush1.bf16.msra.mxu0 %v1068_v60  ;;  %533 = vmatprep.mubr.bf16.mxu0 %v1267_v1 }
  0x96   :  { %507 = vmatprep.subr.bf16.mxu0 %v1073_v61  ;;  %v597_v61 = vld [vmem:[#allocation10 + $0x28] sm:$0xff] }
  0x99   :  { %508 = vmatpush1.bf16.msra.mxu0 %v1071_v0 }
  0x9a   :  { %509 = vmatprep.subr.bf16.mxu0 %v1076_v2 }
  0x9d   :  { %510 = vmatpush1.bf16.msra.mxu0 %v1074_v5 }
  0x9e   :  { %511 = vmatprep.subr.bf16.mxu0 %v1079_v6  ;;  %v607_v6 = vmul.f32 %v600_v33, %v598_v56 }
  0xa1   :  { %512 = vmatpush1.bf16.msra.mxu0 %v1077_v9  ;;  %v606_v9 = vmul.f32 %v600_v33, %v597_v61 }
  0xa2   :  { %513 = vmatprep.subr.bf16.mxu0 %v1085_v10 }
  0xa5   :  { %514 = vmatpush1.bf16.msra.mxu0 %v1083_v12 }
  0xa6   :  { %515 = vmatprep.subr.bf16.mxu0 %v1088_v13 }
  0xa9   :  { %516 = vmatpush1.bf16.msra.mxu0 %v1086_v14 }
  0xac   :  { %534 = vmatmul.mubr.bf16.vlgmr.msra.gmra.mrb[0].mxu0 %v1089_v15 }
  0xad   :  { %543 = vmatprep.mubr.bf16.mxu0 %v1267_v1 }
  0xb4   :  { %544 = vmatmul.mubr.bf16.gmra.mrb[4].mxu0 %v1090_v16 }
 0x17f   :  { %v535_v30 = vpop.f32.mrb[0].mxu0 }
 0x180   :  { %v554_v35 = vadd.f32 %v535_v30, %v97_v28  ;;  %v537_v36 = vpop.f32.mrb[1].mxu0 }
 0x181   :  { %v555_v39 = vadd.f32 %v537_v36, %v101_v29  ;;  %v539_v40 = vpop.f32.mrb[2].mxu0 }
 0x182   :  { %v583_v41 = vmul.f32 %v582_v31, %v554_v35  ;;  %v556_v43 = vadd.f32 %v539_v40, %v97_v28  ;;  %v541_v45 = vpop.f32.mrb[3].mxu0 }
 0x183   :  { %v584_v46 = vmul.f32 %v582_v31, %v555_v39  ;;  %v557_v47 = vadd.f32 %v541_v45, %v101_v29 }
 0x184   :  { %v585_v50 = vmul.f32 %v582_v31, %v556_v43  ;;  %v609_v52 = vadd.f32 %v601_v42, %v583_v41 }
 0x185   :  { %v586_v51 = vmul.f32 %v582_v31, %v557_v47  ;;  %v610_v57 = vadd.f32 %v602_v48, %v584_v46 }
 0x186   :  { %v611_v53 = vadd.f32 %v603_v44, %v585_v50 }
 0x187   :  { %v545_v54 = vpop.f32.mrb[4].mxu0  ;;  %v612_v58 = vadd.f32 %v604_v49, %v586_v51 }
 0x188   :  { %v558_v59 = vadd.f32 %v545_v54, %v97_v28  ;;  %v547_v60 = vpop.f32.mrb[5].mxu0  ;;  %v617_v63 = vpack.c.bf16 %v611_v53, %v609_v52 }
 0x189   :  { %v559_v0 = vadd.f32 %v547_v60, %v101_v29  ;;  %v549_v1 = vpop.f32.mrb[6].mxu0  ;;  %v618_v2 = vpack.c.bf16 %v612_v58, %v610_v57 }
 0x18a   :  { %v587_v3 = vmul.f32 %v582_v31, %v558_v59  ;;  %v560_v5 = vadd.f32 %v549_v1, %v97_v28  ;;  %v551_v7 = vpop.f32.mrb[7].mxu0 }
 0x18b   :  { %v588_v8 = vmul.f32 %v582_v31, %v559_v0  ;;  %v561_v10 = vadd.f32 %v551_v7, %v101_v29  ;;  %857 = vmatprep.mubr.bf16.mxu1 %v618_v2 }
 0x18c   :  { %v589_v12 = vmul.f32 %v582_v31, %v560_v5  ;;  %858 = vmatmul.mubr.bf16.vlgmr.msra.gmra.mrb[0].mxu1 %v617_v63  ;;  %v613_v14 = vadd.f32 %v605_v4, %v587_v3 }
 0x18d   :  { %v590_v13 = vmul.f32 %v582_v31, %v561_v10  ;;  %v614_v16 = vadd.f32 %v606_v9, %v588_v8 }
 0x18e   :  { %v615_v15 = vadd.f32 %v607_v6, %v589_v12 }
 0x18f   :  { %v616_v17 = vadd.f32 %v608_v11, %v590_v13 }
 0x190   :  { %v619_v18 = vpack.c.bf16 %v615_v15, %v613_v14 }
 0x191   :  { %v620_v19 = vpack.c.bf16 %v616_v17, %v614_v16 }
 0x193   :  { %867 = vmatprep.mubr.bf16.mxu1 %v620_v19 }
 0x194   :  { %868 = vmatmul.mubr.bf16.gmra.mrb[4].mxu1 %v619_v18 }
 0x25f   :  { %v859_v23 = vpop.f32.mrb[0].mxu1 }
 0x260   :  { %v860_v26 = vadd.f32 %v859_v23, %v658_v21  ;;  %v861_v28 = vpop.f32.mrb[1].mxu1 }
 0x261   :  { %v862_v29 = vadd.f32 %v861_v28, %v662_v22  ;;  %v863_v30 = vpop.f32.mrb[2].mxu1 }
 0x262   :  { %878 = vst [vmem:[#allocation13] sm:$0xff] %v860_v26  ;;  %v864_v31 = vadd.f32 %v863_v30, %v658_v21  ;;  %v865_v32 = vpop.f32.mrb[3].mxu1 }
 0x263   :  { %879 = vst [vmem:[#allocation13 + $0x8] sm:$0xff] %v862_v29  ;;  %v866_v33 = vadd.f32 %v865_v32, %v662_v22 }
 0x264   :  { %880 = vst [vmem:[#allocation13 + $0x10] sm:$0xff] %v864_v31 }
 0x265   :  { %881 = vst [vmem:[#allocation13 + $0x18] sm:$0xff] %v866_v33 }
 0x267   :  { %v869_v34 = vpop.f32.mrb[4].mxu1 }
 0x268   :  { %v870_v35 = vadd.f32 %v869_v34, %v658_v21  ;;  %v871_v36 = vpop.f32.mrb[5].mxu1 }
 0x269   :  { %v872_v25 = vadd.f32 %v871_v36, %v662_v22  ;;  %v873_v24 = vpop.f32.mrb[6].mxu1 }
 0x26a   :  { %882 = vst [vmem:[#allocation13 + $0x20] sm:$0xff] %v870_v35  ;;  %v874_v27 = vadd.f32 %v873_v24, %v658_v21  ;;  %v875_v37 = vpop.f32.mrb[7].mxu1 }
 0x26b   :  { %883 = vst [vmem:[#allocation13 + $0x28] sm:$0xff] %v872_v25  ;;  %v876_v38 = vadd.f32 %v875_v37, %v662_v22 }
 0x26c   :  { %884 = vst [vmem:[#allocation13 + $0x30] sm:$0xff] %v874_v27 }
 0x26d   :  { %885 = vst [vmem:[#allocation13 + $0x38] sm:$0xff] %v876_v38 }
 0x26e   :  { %1238 = shalt.err (!%p1235_p8)
}
 0x26f   :  { %s1239_s22 = scalar_lea.hbm %s1418_s8, 1024 }
 0x270   :  { %p1240_p9 = scmp.ne.s32.totalorder %s1418_s8, %s1239_s22  ;;  %p1243_p10 = scmp.lt.u32.totalorder %s1239_s22, %s1418_s8 }
 0x272   :  { %p1245_p11 = pnand %p1243_p10, %p1240_p9 }
 0x274   :  { %1248 = shalt.err (!%p1245_p11)
}
 0x275   :  { %897 = dma.vmem_to_hbm [thread:$0]  %s892_s7, 1024, %s1418_s8, [#allocation7], %s1264_s2, %s1264_s2, %s1265_s20  }
 0x276   :  { %1255 = dma.done.wait [#allocation7], 1024  }
 0x277   :  { %1256 = vsyncadd [#allocation7], 4294966272 }
 0x278   :  { %901 = vsyncpa [#allocation6], 1 }
 0x279   :  { %902 = vsyncpa [#allocation9], 1 }
 0x27a   :  { %903 = vsyncpa [#allocation12], 1 }
 0x27b   :  { %904 = vsyncpa [#allocation7], 1 }

</bundles_post_ra>
